<compile_context>
chip_gen: v7x
topology: tpu7x:2x2x1
jax: 0.10.0
libtpu: 0.0.40
codegen_flags: <defaults>
</compile_context>

<pallas_src>
import jax
import jax.numpy as jnp
from jax.experimental import pallas as pl
from jax.experimental.pallas import tpu as pltpu

LANE = 128


def _round_up(x, m):
    return ((x + m - 1) // m) * m


def _policy_mlp_kernel(x_ref, w1_ref, b1_ref, wh0_ref, bh0_ref, wh1_ref, bh1_ref,
                       w2_ref, b2_ref, out_ref):
    # ---- l1 + ReLU (bf16 MXU operands, f32 accumulate) ---------------------
    # TODO(synk): K=obs_dims(=4) matmul barely uses the MXU; could be 4 VPU FMAs if it
    # ever shows up on the critical path.
    x = x_ref[...].astype(jnp.bfloat16)
    h = jnp.dot(x, w1_ref[...], preferred_element_type=jnp.float32)
    h = jnp.maximum(h + b1_ref[...], 0.0)

    # ---- hidden feature layers (Linear + ReLU) x n_layers ------------------
    h = jnp.dot(h.astype(jnp.bfloat16), wh0_ref[...], preferred_element_type=jnp.float32)
    h = jnp.maximum(h + bh0_ref[...], 0.0)
    h = jnp.dot(h.astype(jnp.bfloat16), wh1_ref[...], preferred_element_type=jnp.float32)
    h = jnp.maximum(h + bh1_ref[...], 0.0)
    # (The nn.Sequential's extra ReLU here is idempotent after the ReLU above -> elided.)

    # ---- l2 + Softmax(dim=-1) over the lane-padded action dim --------------
    # Padded output columns have zero weights and a -1e30 bias, so after max-subtraction
    # exp() maps them to exactly 0 and the normalization over the real actions is unchanged.
    logits = jnp.dot(h.astype(jnp.bfloat16), w2_ref[...], preferred_element_type=jnp.float32)
    logits = logits + b2_ref[...]
    logits = logits - jnp.max(logits, axis=-1, keepdims=True)
    e = jnp.exp(logits)
    inv = pl.reciprocal(jnp.sum(e, axis=-1, keepdims=True), approx=True)
    out_ref[...] = (e * inv).astype(out_ref.dtype)


def policy_forward(x, kparams, *, block_b=256):
    """Run the fused MLP policy kernel.

    x: [B, obs_dims] float32.  kparams: output of prepare_params() (bf16 weights,
    f32 biases, output layer lane-padded to a multiple of 128).
    Returns [B, action_dims] float32 probabilities.
    """
    B, obs = x.shape
    act = kparams["action_dims"]
    hid = kparams["w1"].shape[1]
    act_pad = kparams["w2"].shape[1]

    # Batch tile: >=8 (sublane multiple), default 256 so the MXU sees a real M dim.
    tb = min(block_b, _round_up(B, 8))
    bp = _round_up(B, tb)
    if bp != B:
        x = jnp.pad(x, ((0, bp - B), (0, 0)))

    tile_map = lambda i: (i, 0)     # x / out: new batch tile per grid step
    const_map = lambda i: (0, 0)    # weights/biases: same block every step -> VMEM-resident

    out = pl.pallas_call(
        _policy_mlp_kernel,
        out_shape=jax.ShapeDtypeStruct((bp, act_pad), jnp.float32),
        grid=(bp // tb,),
        in_specs=[
            pl.BlockSpec((tb, obs), tile_map),
            pl.BlockSpec((obs, hid), const_map),
            pl.BlockSpec((1, hid), const_map),
            pl.BlockSpec((hid, hid), const_map),
            pl.BlockSpec((1, hid), const_map),
            pl.BlockSpec((hid, hid), const_map),
            pl.BlockSpec((1, hid), const_map),
            pl.BlockSpec((hid, act_pad), const_map),
            pl.BlockSpec((1, act_pad), const_map),
        ],
        out_specs=pl.BlockSpec((tb, act_pad), tile_map),
        compiler_params=pltpu.CompilerParams(dimension_semantics=("parallel",)),
    )(x, kparams["w1"], kparams["b1"], kparams["wh0"], kparams["bh0"],
      kparams["wh1"], kparams["bh1"], kparams["w2"], kparams["b2"])

    return out[:B, :act]


def init_params(key, obs_dims, action_dims, layer_size=128):
    """Deterministic init mimicking PyTorch's default Linear init (U(-1/sqrt(fan_in), +))."""
    def linear(k, fan_in, fan_out):
        k1, k2 = jax.random.split(k)
        bound = 1.0 / jnp.sqrt(fan_in)
        w = jax.random.uniform(k1, (fan_in, fan_out), jnp.float32, -bound, bound)
        b = jax.random.uniform(k2, (1, fan_out), jnp.float32, -bound, bound)
        return w, b

    k1, k2, k3, k4 = jax.random.split(key, 4)
    w1, b1 = linear(k1, obs_dims, layer_size)
    wh0, bh0 = linear(k2, layer_size, layer_size)
    wh1, bh1 = linear(k3, layer_size, layer_size)
    w2, b2 = linear(k4, layer_size, action_dims)
    return {"w1": w1, "b1": b1, "wh0": wh0, "bh0": bh0,
            "wh1": wh1, "bh1": bh1, "w2": w2, "b2": b2}


def prepare_params(p):
    """Kernel-side params: weights -> bf16 (MXU operands), biases stay f32,
    output layer padded to a lane-dense multiple of 128 columns (pad bias = -1e30)."""
    act = p["w2"].shape[1]
    act_pad = _round_up(max(act, LANE), LANE)
    pad = act_pad - act
    w2 = jnp.pad(p["w2"], ((0, 0), (0, pad)))
    b2 = jnp.pad(p["b2"], ((0, 0), (0, pad)), constant_values=-1e30)
    return {
        "w1": p["w1"].astype(jnp.bfloat16), "b1": p["b1"],
        "wh0": p["wh0"].astype(jnp.bfloat16), "bh0": p["bh0"],
        "wh1": p["wh1"].astype(jnp.bfloat16), "bh1": p["bh1"],
        "w2": w2.astype(jnp.bfloat16), "b2": b2,
        "action_dims": act,
    }


def policy_forward_ref_f32(x, p):
    """Pure-JAX f32 reference (PyTorch semantics)."""
    h = jnp.maximum(x @ p["w1"] + p["b1"], 0.0)
    h = jnp.maximum(h @ p["wh0"] + p["bh0"], 0.0)
    h = jnp.maximum(h @ p["wh1"] + p["bh1"], 0.0)
    logits = h @ p["w2"] + p["b2"]
    return jax.nn.softmax(logits, axis=-1)


def policy_forward_ref_bf16(x, p):
    """Pure-JAX reference mirroring the kernel's mixed precision (bf16 dot, f32 acc)."""
    def mm(a, w):
        return jnp.dot(a.astype(jnp.bfloat16), w.astype(jnp.bfloat16),
                       preferred_element_type=jnp.float32)
    h = jnp.maximum(mm(x, p["w1"]) + p["b1"], 0.0)
    h = jnp.maximum(mm(h, p["wh0"]) + p["bh0"], 0.0)
    h = jnp.maximum(mm(h, p["wh1"]) + p["bh1"], 0.0)
    logits = mm(h, p["w2"]) + p["b2"]
    return jax.nn.softmax(logits, axis=-1)


if __name__ == "__main__":
    # CartPole-like setup: obs_space_dims=4, action_space_dims=2, n_layers=2, layer_size=128.
    # B=300 rollout states batched into one call (pads to 2 grid tiles of 256 rows).
    B, OBS, ACT, HID = 300, 4, 2, 128

    key = jax.random.PRNGKey(0)
    k_x, k_p = jax.random.split(key)
    x = jax.random.normal(k_x, (B, OBS), jnp.float32)
    params = init_params(k_p, OBS, ACT, HID)
    kparams = prepare_params(params)

    probs = jax.block_until_ready(policy_forward(x, kparams))

    ref_mixed = policy_forward_ref_bf16(x, params)   # same precision path as kernel
    ref_f32 = policy_forward_ref_f32(x, params)      # sanity check vs exact f32

    assert probs.shape == (B, ACT)
    assert jnp.allclose(jnp.sum(probs, axis=-1), 1.0, atol=5e-3)        # approx reciprocal
    assert jnp.allclose(probs, ref_mixed, atol=5e-3, rtol=5e-3)
    assert jnp.allclose(probs, ref_f32, atol=5e-2)                      # bf16 weight quant
    print("KERNEL_OK")
</pallas_src>

<mosaic_0001>
module attributes {stable_mosaic.version = 11 : i64} {
  func.func @_policy_mlp_kernel(%arg0: i32, %arg1: memref<256x4xf32, #tpu.memory_space<vmem>>, %arg2: memref<4x128xbf16, #tpu.memory_space<vmem>>, %arg3: memref<1x128xf32, #tpu.memory_space<vmem>>, %arg4: memref<128x128xbf16, #tpu.memory_space<vmem>>, %arg5: memref<1x128xf32, #tpu.memory_space<vmem>>, %arg6: memref<128x128xbf16, #tpu.memory_space<vmem>>, %arg7: memref<1x128xf32, #tpu.memory_space<vmem>>, %arg8: memref<128x128xbf16, #tpu.memory_space<vmem>>, %arg9: memref<1x128xf32, #tpu.memory_space<vmem>>, %arg10: memref<256x128xf32, #tpu.memory_space<vmem>>) attributes {dimension_semantics = [#tpu.dimension_semantics<parallel>], iteration_bounds = array<i64: 2>, scalar_prefetch = 0 : i64, scratch_operands = 0 : i64, tpu.core_type = #tpu.core_type<tc>, window_params = [{transform_indices = @transform_0, window_bounds = array<i64: 256, 4>}, {pipeline_mode = #tpu.pipeline_mode<synchronous>, transform_indices = @transform_1, window_bounds = array<i64: 4, 128>}, {pipeline_mode = #tpu.pipeline_mode<synchronous>, transform_indices = @transform_2, window_bounds = array<i64: 1, 128>}, {pipeline_mode = #tpu.pipeline_mode<synchronous>, transform_indices = @transform_3, window_bounds = array<i64: 128, 128>}, {pipeline_mode = #tpu.pipeline_mode<synchronous>, transform_indices = @transform_4, window_bounds = array<i64: 1, 128>}, {pipeline_mode = #tpu.pipeline_mode<synchronous>, transform_indices = @transform_5, window_bounds = array<i64: 128, 128>}, {pipeline_mode = #tpu.pipeline_mode<synchronous>, transform_indices = @transform_6, window_bounds = array<i64: 1, 128>}, {pipeline_mode = #tpu.pipeline_mode<synchronous>, transform_indices = @transform_7, window_bounds = array<i64: 128, 128>}, {pipeline_mode = #tpu.pipeline_mode<synchronous>, transform_indices = @transform_8, window_bounds = array<i64: 1, 128>}, {transform_indices = @transform_9, window_bounds = array<i64: 256, 128>}]} {
    %c0 = arith.constant 0 : index
    %c0_0 = arith.constant 0 : index
    %0 = vector.load %arg1[%c0, %c0_0] : memref<256x4xf32, #tpu.memory_space<vmem>>, vector<256x4xf32>
    %1 = arith.truncf %0 : vector<256x4xf32> to vector<256x4xbf16>
    %c0_1 = arith.constant 0 : index
    %c0_2 = arith.constant 0 : index
    %2 = vector.load %arg2[%c0_1, %c0_2] : memref<4x128xbf16, #tpu.memory_space<vmem>>, vector<4x128xbf16>
    %cst = arith.constant dense<0.000000e+00> : vector<256x128xf32>
    %3 = tpu.matmul %1, %2, %cst {dimension_numbers = #tpu.dot_dimension_numbers<[1], [0], [0], [1], [0, 0, 1, 1], [], []>} : vector<256x4xbf16>, vector<4x128xbf16>, vector<256x128xf32> -> vector<256x128xf32>
    %c0_3 = arith.constant 0 : index
    %c0_4 = arith.constant 0 : index
    %4 = vector.load %arg3[%c0_3, %c0_4] : memref<1x128xf32, #tpu.memory_space<vmem>>, vector<1x128xf32>
    %5 = vector.broadcast %4 : vector<1x128xf32> to vector<256x128xf32>
    %6 = arith.addf %3, %5 : vector<256x128xf32>
    %cst_5 = arith.constant 0.000000e+00 : f32
    %7 = vector.broadcast %cst_5 : f32 to vector<256x128xf32>
    %8 = arith.maximumf %6, %7 : vector<256x128xf32>
    %9 = arith.truncf %8 : vector<256x128xf32> to vector<256x128xbf16>
    %c0_6 = arith.constant 0 : index
    %c0_7 = arith.constant 0 : index
    %10 = vector.load %arg4[%c0_6, %c0_7] : memref<128x128xbf16, #tpu.memory_space<vmem>>, vector<128x128xbf16>
    %cst_8 = arith.constant dense<0.000000e+00> : vector<256x128xf32>
    %11 = tpu.matmul %9, %10, %cst_8 {dimension_numbers = #tpu.dot_dimension_numbers<[1], [0], [0], [1], [0, 0, 1, 1], [], []>} : vector<256x128xbf16>, vector<128x128xbf16>, vector<256x128xf32> -> vector<256x128xf32>
    %c0_9 = arith.constant 0 : index
    %c0_10 = arith.constant 0 : index
    %12 = vector.load %arg5[%c0_9, %c0_10] : memref<1x128xf32, #tpu.memory_space<vmem>>, vector<1x128xf32>
    %13 = vector.broadcast %12 : vector<1x128xf32> to vector<256x128xf32>
    %14 = arith.addf %11, %13 : vector<256x128xf32>
    %cst_11 = arith.constant 0.000000e+00 : f32
    %15 = vector.broadcast %cst_11 : f32 to vector<256x128xf32>
    %16 = arith.maximumf %14, %15 : vector<256x128xf32>
    %17 = arith.truncf %16 : vector<256x128xf32> to vector<256x128xbf16>
    %c0_12 = arith.constant 0 : index
    %c0_13 = arith.constant 0 : index
    %18 = vector.load %arg6[%c0_12, %c0_13] : memref<128x128xbf16, #tpu.memory_space<vmem>>, vector<128x128xbf16>
    %cst_14 = arith.constant dense<0.000000e+00> : vector<256x128xf32>
    %19 = tpu.matmul %17, %18, %cst_14 {dimension_numbers = #tpu.dot_dimension_numbers<[1], [0], [0], [1], [0, 0, 1, 1], [], []>} : vector<256x128xbf16>, vector<128x128xbf16>, vector<256x128xf32> -> vector<256x128xf32>
    %c0_15 = arith.constant 0 : index
    %c0_16 = arith.constant 0 : index
    %20 = vector.load %arg7[%c0_15, %c0_16] : memref<1x128xf32, #tpu.memory_space<vmem>>, vector<1x128xf32>
    %21 = vector.broadcast %20 : vector<1x128xf32> to vector<256x128xf32>
    %22 = arith.addf %19, %21 : vector<256x128xf32>
    %cst_17 = arith.constant 0.000000e+00 : f32
    %23 = vector.broadcast %cst_17 : f32 to vector<256x128xf32>
    %24 = arith.maximumf %22, %23 : vector<256x128xf32>
    %25 = arith.truncf %24 : vector<256x128xf32> to vector<256x128xbf16>
    %c0_18 = arith.constant 0 : index
    %c0_19 = arith.constant 0 : index
    %26 = vector.load %arg8[%c0_18, %c0_19] : memref<128x128xbf16, #tpu.memory_space<vmem>>, vector<128x128xbf16>
    %cst_20 = arith.constant dense<0.000000e+00> : vector<256x128xf32>
    %27 = tpu.matmul %25, %26, %cst_20 {dimension_numbers = #tpu.dot_dimension_numbers<[1], [0], [0], [1], [0, 0, 1, 1], [], []>} : vector<256x128xbf16>, vector<128x128xbf16>, vector<256x128xf32> -> vector<256x128xf32>
    %c0_21 = arith.constant 0 : index
    %c0_22 = arith.constant 0 : index
    %28 = vector.load %arg9[%c0_21, %c0_22] : memref<1x128xf32, #tpu.memory_space<vmem>>, vector<1x128xf32>
    %29 = vector.broadcast %28 : vector<1x128xf32> to vector<256x128xf32>
    %30 = arith.addf %27, %29 : vector<256x128xf32>
    %cst_23 = arith.constant dense<0xFF800000> : vector<256xf32>
    %31 = vector.multi_reduction <maximumf>, %30, %cst_23 [1] : vector<256x128xf32> to vector<256xf32>
    %32 = vector.shape_cast %31 : vector<256xf32> to vector<256x1xf32>
    %33 = vector.broadcast %32 : vector<256x1xf32> to vector<256x128xf32>
    %34 = arith.subf %30, %33 : vector<256x128xf32>
    %35 = math.exp %34 : vector<256x128xf32>
    %cst_24 = arith.constant dense<0.000000e+00> : vector<256xf32>
    %36 = vector.multi_reduction <add>, %35, %cst_24 [1] : vector<256x128xf32> to vector<256xf32>
    %37 = vector.shape_cast %36 : vector<256xf32> to vector<256x1xf32>
    %38 = tpu.reciprocal %37 {approx = true} : vector<256x1xf32> -> vector<256x1xf32>
    %39 = vector.broadcast %38 : vector<256x1xf32> to vector<256x128xf32>
    %40 = arith.mulf %35, %39 : vector<256x128xf32>
    %c0_25 = arith.constant 0 : index
    %c0_26 = arith.constant 0 : index
    %41 = vector.load %arg10[%c0_25, %c0_26] : memref<256x128xf32, #tpu.memory_space<vmem>>, vector<256x128xf32>
    tpu.vector_store %arg10[%c0_25, %c0_26], %40 {strides = array<i32>} : memref<256x128xf32, #tpu.memory_space<vmem>>, vector<256x128xf32>,
    return
  }
  func.func @transform_0(%arg0: i32) -> (i32, i32) {
    %c0_i32 = arith.constant 0 : i32
    %c0_i32_0 = arith.constant 0 : i32
    return %arg0, %c0_i32 : i32, i32
  }
  func.func @transform_1(%arg0: i32) -> (i32, i32) {
    %c0_i32 = arith.constant 0 : i32
    %c0_i32_0 = arith.constant 0 : i32
    %c0_i32_1 = arith.constant 0 : i32
    return %c0_i32, %c0_i32_0 : i32, i32
  }
  func.func @transform_2(%arg0: i32) -> (i32, i32) {
    %c0_i32 = arith.constant 0 : i32
    %c0_i32_0 = arith.constant 0 : i32
    %c0_i32_1 = arith.constant 0 : i32
    return %c0_i32, %c0_i32_0 : i32, i32
  }
  func.func @transform_3(%arg0: i32) -> (i32, i32) {
    %c0_i32 = arith.constant 0 : i32
    %c0_i32_0 = arith.constant 0 : i32
    %c0_i32_1 = arith.constant 0 : i32
    return %c0_i32, %c0_i32_0 : i32, i32
  }
  func.func @transform_4(%arg0: i32) -> (i32, i32) {
    %c0_i32 = arith.constant 0 : i32
    %c0_i32_0 = arith.constant 0 : i32
    %c0_i32_1 = arith.constant 0 : i32
    return %c0_i32, %c0_i32_0 : i32, i32
  }
  func.func @transform_5(%arg0: i32) -> (i32, i32) {
    %c0_i32 = arith.constant 0 : i32
    %c0_i32_0 = arith.constant 0 : i32
    %c0_i32_1 = arith.constant 0 : i32
    return %c0_i32, %c0_i32_0 : i32, i32
  }
  func.func @transform_6(%arg0: i32) -> (i32, i32) {
    %c0_i32 = arith.constant 0 : i32
    %c0_i32_0 = arith.constant 0 : i32
    %c0_i32_1 = arith.constant 0 : i32
    return %c0_i32, %c0_i32_0 : i32, i32
  }
  func.func @transform_7(%arg0: i32) -> (i32, i32) {
    %c0_i32 = arith.constant 0 : i32
    %c0_i32_0 = arith.constant 0 : i32
    %c0_i32_1 = arith.constant 0 : i32
    return %c0_i32, %c0_i32_0 : i32, i32
  }
  func.func @transform_8(%arg0: i32) -> (i32, i32) {
    %c0_i32 = arith.constant 0 : i32
    %c0_i32_0 = arith.constant 0 : i32
    %c0_i32_1 = arith.constant 0 : i32
    return %c0_i32, %c0_i32_0 : i32, i32
  }
  func.func @transform_9(%arg0: i32) -> (i32, i32) {
    %c0_i32 = arith.constant 0 : i32
    %c0_i32_0 = arith.constant 0 : i32
    return %arg0, %c0_i32 : i32, i32
  }
}

</mosaic_0001>

<bundles_post_ra>
// kernel: tpu_custom_call.1
= control target key start
LH: loop header
LB: loop body
LE: loop exit
PB: predicated region body
PF: predicated region fallthrough
CT: control target
= control target key end

     0   :  { %14 = vsyncpa [#allocation3], 0  ;;  %s3186_s0 = inlined_call_operand.vmem [shape: f32[512,4], index: 0, kind: input, shape index: {}]   ;;  %s3187_s1 = inlined_call_operand.vmem [shape: bf16[4,128], index: 1, kind: input, shape index: {}]   ;;  %s3188_s2 = inlined_call_operand.vmem [shape: f32[1,128], index: 2, kind: input, shape index: {}]   ;;  %s3189_s3 = inlined_call_operand.vmem [shape: bf16[128,128], index: 3, kind: input, shape index: {}]   ;;  %s3190_s4 = inlined_call_operand.vmem [shape: f32[1,128], index: 4, kind: input, shape index: {}]   ;;  %s3191_s5 = inlined_call_operand.vmem [shape: bf16[128,128], index: 5, kind: input, shape index: {}]   ;;  %s3192_s6 = inlined_call_operand.vmem [shape: f32[1,128], index: 6, kind: input, shape index: {}]   ;;  %s3193_s7 = inlined_call_operand.vmem [shape: bf16[128,128], index: 7, kind: input, shape index: {}]   ;;  %s3194_s8 = inlined_call_operand.vmem [shape: f32[1,128], index: 8, kind: input, shape index: {}]   ;;  %s3195_s9 = inlined_call_operand.hbm [shape: f32[512,128], index: 9, kind: output, shape index: {}]  }
   0x1   :  { %16 = vsyncpa [#allocation3 + $0x1], 0  ;;  %s2492_s30 = smov 0   ;;  %s2494_s10 = smov 0  }
   0x2   :  { %s2496_s11 = smov 0   ;;  %s2498_s12 = smov 0  }
   0x3 LB: > { %s2513_s13 = sadd.s32 4294967295, %s2437_s12   ;;  %s1841_s14 = sadd.s32 4294967294, %s2437_s12   ;;  %s2437_s12 = sphi %s2498_s12, %s3201_s12   ;;  %s2433_s11 = sphi %s2496_s11, %s3200_s11   ;;  %s2429_s10 = sphi %s2494_s10, %s3199_s10   ;;  %s2425_s30 = sphi %s2492_s30, %s3198_s30  }
   0x4   : > { %s2517_s15 = sadd.s32 1, %s2437_s12   ;;  %s223_s16 = sadd.s32 1, %s2433_s11 }
   0x5   : > { %s220_s17 = ssub.s32 %s2437_s12, %s2517_s15  ;;  %p233_p0 = scmp.ne.s32.totalorder %s2433_s11, %s2429_s10 }
   0x6   : > { %p221_p1 = scmp.eq.s32.totalorder %s220_s17, 0  ;;  %p234_p2 = scmp.eq.s32.totalorder %s2513_s13, 1 }
   0x7   : > { %p239_p3 = scmp.ne.s32.totalorder %s2429_s10, %s2425_s30  ;;  %p240_p4 = scmp.eq.s32.totalorder %s1841_s14, 1 }
   0x8   : > { %s2528_s18 = scalar_select %p221_p1, %s2433_s11, %s223_s16  }
   0x9   : > { %p2530_p5 = por %p234_p2, %p233_p0  ;;  %p2534_p6 = por %p240_p4, %p239_p3 }
   0xa   : > { %p1844_p7 = scmp.ge.s32.totalorder %s2437_s12, 1  ;;  %p291_p8 = scmp.lt.s32.totalorder %s2437_s12, 3 }
   0xc   : > { %p292_p9 = pnand %p1844_p7, %p291_p8 }
   0xd   : > { %v383_v0 = vld [vmem:[%s3187_s1] sm:$0x3] (!%p292_p9)  ;;  %vm440_vm0 = vcmask (!%p292_p9), 1041408   ;;  %s1846_s23 = sshll.u32 (!%p292_p9), %s2513_s13, 5  ;;  %v2224_v3 = vld [vmem:[%s3189_s3 + $0x8] sm:$0xff] (!%p292_p9)   ;;  %v2225_v4 = vld [vmem:[%s3189_s3 + $0x10] sm:$0xff] (!%p292_p9)  }
   0xe   : > { %295 = sbr.rel (%p292_p9) target bundleno = 1299 (0x513), region = 56  ;;  %v2223_v1 = vld [vmem:[%s3189_s3] sm:$0xff] (!%p292_p9)   ;;  %2181 = vmatprep.subr.msk.bf16.mxu0 (!%p292_p9), %vm440_vm0, %v383_v0  ;;  %v442_v2 = vsel (!%p292_p9), %vm440_vm0, %v383_v0, 0  ;;  %p328_p10 = scmp.lt.s32.totalorder (!%p292_p9), %s1846_s23, 63  ;;  %v2226_v5 = vld [vmem:[%s3189_s3 + $0x18] sm:$0xff] (!%p292_p9)   ;;  %vm391_vm1 = vcmask (!%p292_p9), 31744  }
   0xf   : > { %1988 = vmatpush3.bf16.msra.mxu0 (!%p292_p9), %v442_v2  ;;  %2021 = vmatprep.subr.bf16.mxu1 (!%p292_p9), %v2223_v1  ;;  %v2227_v17 = vld [vmem:[%s3189_s3 + $0x20] sm:$0xff] (!%p292_p9)   ;;  %v2228_v22 = vld [vmem:[%s3189_s3 + $0x28] sm:$0xff] (!%p292_p9)   ;;  %v2229_v56 = vld [vmem:[%s3189_s3 + $0x30] sm:$0xff] (!%p292_p9)   ;;  %s1897_s27 = sshll.u32 (!%p292_p9), %s2513_s13, 12  ;;  %s2439_s22 = smov (!%p292_p9), [#allocation2]  }
  0x10   : > { %2022 = vmatpush3.bf16.msra.mxu1 (!%p292_p9), %v2223_v1  ;;  %v2230_v57 = vld [vmem:[%s3189_s3 + $0x38] sm:$0xff] (!%p292_p9)   ;;  %v2231_v58 = vld [vmem:[%s3191_s5] sm:$0xff] (!%p292_p9)   ;;  %v2232_v59 = vld [vmem:[%s3191_s5 + $0x8] sm:$0xff] (!%p292_p9)   ;;  %s3137_s16 = scalar_lea.hbm (!%p292_p9), %s3195_s9, %s1897_s27 }
  0x11   : > { %2023 = vmatprep.subr.bf16.mxu1 (!%p292_p9), %v2224_v3  ;;  %2069 = vmatprep.subr.bf16.mxu0 (!%p292_p9), %v2231_v58  ;;  %v2233_v60 = vld [vmem:[%s3191_s5 + $0x10] sm:$0xff] (!%p292_p9)   ;;  %v2234_v61 = vld [vmem:[%s3191_s5 + $0x18] sm:$0xff] (!%p292_p9)   ;;  %v2235_v62 = vld [vmem:[%s3191_s5 + $0x20] sm:$0xff] (!%p292_p9)  }
  0x12   : > { %v2236_v63 = vld [vmem:[%s3191_s5 + $0x28] sm:$0xff] (!%p292_p9)   ;;  %v2237_v0 = vld [vmem:[%s3191_s5 + $0x30] sm:$0xff] (!%p292_p9)   ;;  %v2645_v1 = vld [vmem:[%s3188_s2] ss:$0 sm:$0xff] (!%p292_p9) }
  0x14   : > { %2024 = vmatpush3.bf16.msra.mxu1 (!%p292_p9), %v2224_v3 }
  0x15   : > { %s3203_s23 = smov (!%p328_p10, %s1846_s23), 63  ;;  %2025 = vmatprep.subr.bf16.mxu1 %v2225_v4 }
  0x16   : > { %s1847_s14 = sshll.u32 %s3203_s23, 3  ;;  %s324_s23 = sand.u32 1, %s2429_s10  }
  0x17   : > { %s2556_s21 = scalar_lea.vmem %s3186_s0, %s1847_s14  ;;  %s1845_s25 = sshll.u32 %s324_s23, 8 }
  0x18   : > { %v335_v6 = vld [vmem:[%s2556_s21] sm:$0xff]  ;;  %v336_v7 = vld [vmem:[%s2556_s21 + $0x8] sm:$0xff]  ;;  %v337_v8 = vld [vmem:[%s2556_s21 + $0x10] sm:$0xff]  ;;  %2026 = vmatpush3.bf16.msra.mxu1 %v2225_v4  ;;  %s3069_s26 = scalar_lea.vmem [#allocation2], %s1845_s25  ;;  %s3145_s13 = scalar_lea.sflag [#allocation3], %s324_s23 }
  0x19   : > { %v367_v9 = vpack.c.bf16 %v336_v7, %v335_v6  ;;  %v338_v10 = vld [vmem:[%s2556_s21 + $0x18] sm:$0xff]  ;;  %v339_v11 = vld [vmem:[%s2556_s21 + $0x20] sm:$0xff]  ;;  %v340_v12 = vld [vmem:[%s2556_s21 + $0x28] sm:$0xff]  ;;  %2027 = vmatprep.subr.bf16.mxu1 %v2226_v5  ;;  %s1779_s28 = sshll.u32 %s3069_s26, 4  ;;  %s3139_s28 = int_to_ptr.vmem [resolvable:$true] %s1779_s28 }
  0x1a   : > { %v368_v13 = vpack.c.bf16 %v338_v10, %v337_v8  ;;  %v369_v14 = vpack.c.bf16 %v340_v12, %v339_v11  ;;  %v341_v15 = vld [vmem:[%s2556_s21 + $0x30] sm:$0xff]  ;;  %v342_v16 = vld [vmem:[%s2556_s21 + $0x38] sm:$0xff]  ;;  %v343_v18 = vld [vmem:[%s2556_s21 + $0x40] sm:$0xff]  ;;  %s2375_s17 = scalar_lea.vmem %s3139_s28, 4096 }
  0x1b   : > { %1989 = vmatprep.mubr.msk.bf16.mxu0 %vm391_vm1, %v367_v9  ;;  %v344_v19 = vld [vmem:[%s2556_s21 + $0x48] sm:$0xff]  ;;  %v370_v20 = vpack.c.bf16 %v342_v16, %v341_v15  ;;  %v345_v23 = vld [vmem:[%s2556_s21 + $0x50] sm:$0xff]  ;;  %v346_v24 = vld [vmem:[%s2556_s21 + $0x58] sm:$0xff]  ;;  %p2376_p11 = scmp.ne.s32.totalorder %s3139_s28, %s2375_s17 }
  0x1c   : > { %1990 = vmatmul.mubr.msk.bf16.vlgmr.msra.gmra.mrb[0].mxu0 %vm391_vm1, %v368_v13  ;;  %2028 = vmatpush3.bf16.msra.mxu1 %v2226_v5  ;;  %v371_v21 = vpack.c.bf16 %v344_v19, %v343_v18  ;;  %v347_v25 = vld [vmem:[%s2556_s21 + $0x60] sm:$0xff]  ;;  %v348_v26 = vld [vmem:[%s2556_s21 + $0x68] sm:$0xff]  ;;  %v372_v27 = vpack.c.bf16 %v346_v24, %v345_v23  ;;  %v349_v29 = vld [vmem:[%s2556_s21 + $0x70] sm:$0xff] }
  0x1d   : > { %1993 = vmatprep.mubr.msk.bf16.mxu0 %vm391_vm1, %v369_v14  ;;  %2029 = vmatprep.subr.bf16.mxu1 %v2227_v17  ;;  %v373_v28 = vpack.c.bf16 %v348_v26, %v347_v25  ;;  %v350_v30 = vld [vmem:[%s2556_s21 + $0x78] sm:$0xff]  ;;  %v351_v31 = vld [vmem:[%s2556_s21 + $0x80] sm:$0xff]  ;;  %v352_v32 = vld [vmem:[%s2556_s21 + $0x88] sm:$0xff]  ;;  %p2377_p12 = pnand %p2376_p11, %p2530_p5 }
  0x1e   : > { %v374_v33 = vpack.c.bf16 %v350_v30, %v349_v29  ;;  %v375_v34 = vpack.c.bf16 %v352_v32, %v351_v31  ;;  %v353_v35 = vld [vmem:[%s2556_s21 + $0x90] sm:$0xff]  ;;  %v354_v36 = vld [vmem:[%s2556_s21 + $0x98] sm:$0xff]  ;;  %v355_v37 = vld [vmem:[%s2556_s21 + $0xa0] sm:$0xff]  ;;  %2070 = vmatpush3.bf16.msra.mxu0 %v2231_v58 }
  0x1f   : > { %v356_v38 = vld [vmem:[%s2556_s21 + $0xa8] sm:$0xff]  ;;  %v376_v39 = vpack.c.bf16 %v354_v36, %v353_v35  ;;  %v357_v41 = vld [vmem:[%s2556_s21 + $0xb0] sm:$0xff]  ;;  %v358_v42 = vld [vmem:[%s2556_s21 + $0xb8] sm:$0xff]  ;;  %2071 = vmatprep.subr.bf16.mxu0 %v2232_v59  ;;  %p2378_p13 = pneg %p2377_p12 }
  0x20   : > { %2030 = vmatpush3.bf16.msra.mxu1 %v2227_v17  ;;  %v377_v40 = vpack.c.bf16 %v356_v38, %v355_v37  ;;  %v359_v43 = vld [vmem:[%s2556_s21 + $0xc0] sm:$0xff]  ;;  %v360_v44 = vld [vmem:[%s2556_s21 + $0xc8] sm:$0xff]  ;;  %v378_v45 = vpack.c.bf16 %v358_v42, %v357_v41  ;;  %v361_v47 = vld [vmem:[%s2556_s21 + $0xd0] sm:$0xff] }
  0x21   : > { %2031 = vmatprep.subr.bf16.mxu1 %v2228_v22  ;;  %v379_v46 = vpack.c.bf16 %v360_v44, %v359_v43  ;;  %v362_v48 = vld [vmem:[%s2556_s21 + $0xd8] sm:$0xff]  ;;  %v363_v49 = vld [vmem:[%s2556_s21 + $0xe0] sm:$0xff]  ;;  %v364_v50 = vld [vmem:[%s2556_s21 + $0xe8] sm:$0xff] }
  0x22   : > { %v380_v51 = vpack.c.bf16 %v362_v48, %v361_v47  ;;  %v381_v52 = vpack.c.bf16 %v364_v50, %v363_v49  ;;  %v365_v53 = vld [vmem:[%s2556_s21 + $0xf0] sm:$0xff]  ;;  %v366_v54 = vld [vmem:[%s2556_s21 + $0xf8] sm:$0xff]  ;;  %2072 = vmatpush3.bf16.msra.mxu0 %v2232_v59  ;;  %s2379_s21 = sshll.u32 %s2439_s22, 4  ;;  %s2380_s21 = int_to_ptr.vmem [resolvable:$false] %s2379_s21 }
  0x23   : > { %v382_v55 = vpack.c.bf16 %v366_v54, %v365_v53  ;;  %2073 = vmatprep.subr.bf16.mxu0 %v2233_v60  ;;  %s2381_s24 = scalar_lea.vmem %s2380_s21, 8192  ;;  %p2382_p0 = scmp.lt.s32.totalorder %s3139_s28, %s2380_s21 }
  0x24   : > { %1994 = vmatmul.mubr.msk.bf16.gmra.mrb[4].mxu0 %vm391_vm1, %v370_v20  ;;  %2032 = vmatpush3.bf16.msra.mxu1 %v2228_v22  ;;  %p2383_p1 = scmp.lt.s32.totalorder %s2381_s24, %s2375_s17 }
  0x25   : > { %1997 = vmatprep.mubr.msk.bf16.mxu0 %vm391_vm1, %v371_v21  ;;  %2033 = vmatprep.subr.bf16.mxu1 %v2229_v56 }
  0x26   : > { %2074 = vmatpush3.bf16.msra.mxu0 %v2233_v60  ;;  %p2384_p2 = por %p2383_p1, %p2382_p0 }
  0x27   : > { %2075 = vmatprep.subr.bf16.mxu0 %v2234_v61 }
  0x28   : > { %2034 = vmatpush3.bf16.msra.mxu1 %v2229_v56  ;;  %p2385_p3 = pnand %p2384_p2, %p2378_p13 }
  0x29   : > { %2035 = vmatprep.subr.bf16.mxu1 %v2230_v57 }
  0x2a   : > { %2076 = vmatpush3.bf16.msra.mxu0 %v2234_v61 }
  0x2b   : > { %2077 = vmatprep.subr.bf16.mxu0 %v2235_v62 }
  0x2c   : > { %1998 = vmatmul.mubr.msk.bf16.gmra.mrb[8].mxu0 %vm391_vm1, %v372_v27  ;;  %2036 = vmatpush3.bf16.msra.mxu1 %v2230_v57 }
  0x2d   : > { %2001 = vmatprep.mubr.msk.bf16.mxu0 %vm391_vm1, %v373_v28 }
  0x2e   : > { %2078 = vmatpush3.bf16.msra.mxu0 %v2235_v62 }
  0x2f   : > { %2079 = vmatprep.subr.bf16.mxu0 %v2236_v63 }
  0x32   : > { %2080 = vmatpush3.bf16.msra.mxu0 %v2236_v63 }
  0x33   : > { %2081 = vmatprep.subr.bf16.mxu0 %v2237_v0 }
  0x34   : > { %2002 = vmatmul.mubr.msk.bf16.gmra.mrb[12].mxu0 %vm391_vm1, %v374_v33 }
  0x35   : > { %2005 = vmatprep.mubr.msk.bf16.mxu0 %vm391_vm1, %v375_v34 }
  0x36   : > { %2082 = vmatpush3.bf16.msra.mxu0 %v2237_v0 }
  0x3c   : > { %2006 = vmatmul.mubr.msk.bf16.gmra.mrb[16].mxu0 %vm391_vm1, %v376_v39 }
  0x3d   : > { %2009 = vmatprep.mubr.msk.bf16.mxu0 %vm391_vm1, %v377_v40 }
  0x44   : > { %2010 = vmatmul.mubr.msk.bf16.gmra.mrb[20].mxu0 %vm391_vm1, %v378_v45 }
  0x45   : > { %2013 = vmatprep.mubr.msk.bf16.mxu0 %vm391_vm1, %v379_v46 }
  0x4c   : > { %2014 = vmatmul.mubr.msk.bf16.gmra.mrb[24].mxu0 %vm391_vm1, %v380_v51 }
  0x4d   : > { %2017 = vmatprep.mubr.msk.bf16.mxu0 %vm391_vm1, %v381_v52 }
  0x54   : > { %2018 = vmatmul.mubr.msk.bf16.gmra.mrb[28].mxu0 %vm391_vm1, %v382_v55 }
  0xef   : > { %v1991_v2 = vpop.f32.mrb[0].mxu0 }
  0xf0   : > { %v487_v3 = vadd.f32 %v1991_v2, %v2645_v1  ;;  %v478_v4 = vpop.f32.mrb[1].mxu0 }
  0xf1   : > { %v479_v5 = vadd.f32 %v2645_v1, %v478_v4  ;;  %v1992_v6 = vpop.f32.mrb[2].mxu0 }
  0xf2   : > { %v490_v7 = vadd.f32 %v1992_v6, %v2645_v1  ;;  %v481_v8 = vpop.f32.mrb[3].mxu0  ;;  %v607_v10 = vmax.f32 %v487_v3, 0.0 }
  0xf3   : > { %v482_v9 = vadd.f32 %v2645_v1, %v481_v8  ;;  %v605_v12 = vmax.f32 %v479_v5, 0.0 }
  0xf4   : > { %v608_v11 = vmax.f32 %v490_v7, 0.0 }
  0xf5   : > { %v606_v13 = vmax.f32 %v482_v9, 0.0 }
  0xf6   : > { %v638_v14 = vpack.c.bf16 %v608_v11, %v607_v10 }
  0xf7   : > { %v1995_v15 = vpop.f32.mrb[4].mxu0  ;;  %v637_v16 = vpack.c.bf16 %v606_v13, %v605_v12 }
  0xf8   : > { %v503_v17 = vadd.f32 %v1995_v15, %v2645_v1  ;;  %v494_v18 = vpop.f32.mrb[5].mxu0 }
  0xf9   : > { %v495_v19 = vadd.f32 %v2645_v1, %v494_v18  ;;  %v1996_v20 = vpop.f32.mrb[6].mxu0  ;;  %2037 = vmatprep.mubr.bf16.mxu1 %v637_v16 }
  0xfa   : > { %v611_v21 = vmax.f32 %v503_v17, 0.0  ;;  %v506_v22 = vadd.f32 %v1996_v20, %v2645_v1  ;;  %v497_v23 = vpop.f32.mrb[7].mxu0  ;;  %2038 = vmatmul.mubr.bf16.vlgmr.msra.gmra.mrb[0].mxu1 %v638_v14 }
  0xfb   : > { %v498_v24 = vadd.f32 %v2645_v1, %v497_v23  ;;  %v609_v26 = vmax.f32 %v495_v19, 0.0 }
  0xfc   : > { %v612_v25 = vmax.f32 %v506_v22, 0.0 }
  0xfd   : > { %v610_v27 = vmax.f32 %v498_v24, 0.0 }
  0xfe   : > { %v640_v28 = vpack.c.bf16 %v612_v25, %v611_v21 }
  0xff   : > { %v639_v29 = vpack.c.bf16 %v610_v27, %v609_v26  ;;  %v1999_v30 = vpop.f32.mrb[8].mxu0 }
 0x100   : > { %v519_v31 = vadd.f32 %v1999_v30, %v2645_v1  ;;  %v510_v32 = vpop.f32.mrb[9].mxu0 }
 0x101   : > { %v511_v33 = vadd.f32 %v2645_v1, %v510_v32  ;;  %v2000_v34 = vpop.f32.mrb[10].mxu0  ;;  %2041 = vmatprep.mubr.bf16.mxu1 %v639_v29 }
 0x102   : > { %v615_v35 = vmax.f32 %v519_v31, 0.0  ;;  %v522_v36 = vadd.f32 %v2000_v34, %v2645_v1  ;;  %v513_v37 = vpop.f32.mrb[11].mxu0  ;;  %2042 = vmatmul.mubr.bf16.gmra.mrb[4].mxu1 %v640_v28 }
 0x103   : > { %v514_v38 = vadd.f32 %v2645_v1, %v513_v37  ;;  %v613_v40 = vmax.f32 %v511_v33, 0.0 }
 0x104   : > { %v616_v39 = vmax.f32 %v522_v36, 0.0 }
 0x105   : > { %v614_v41 = vmax.f32 %v514_v38, 0.0 }
 0x106   : > { %v642_v42 = vpack.c.bf16 %v616_v39, %v615_v35 }
 0x107   : > { %v641_v43 = vpack.c.bf16 %v614_v41, %v613_v40  ;;  %v2003_v44 = vpop.f32.mrb[12].mxu0 }
 0x108   : > { %v535_v45 = vadd.f32 %v2003_v44, %v2645_v1  ;;  %v526_v46 = vpop.f32.mrb[13].mxu0 }
 0x109   : > { %v527_v47 = vadd.f32 %v2645_v1, %v526_v46  ;;  %v2004_v48 = vpop.f32.mrb[14].mxu0  ;;  %2045 = vmatprep.mubr.bf16.mxu1 %v641_v43 }
 0x10a   : > { %v619_v49 = vmax.f32 %v535_v45, 0.0  ;;  %v538_v50 = vadd.f32 %v2004_v48, %v2645_v1  ;;  %v529_v51 = vpop.f32.mrb[15].mxu0  ;;  %2046 = vmatmul.mubr.bf16.gmra.mrb[8].mxu1 %v642_v42 }
 0x10b   : > { %v530_v52 = vadd.f32 %v2645_v1, %v529_v51  ;;  %v617_v54 = vmax.f32 %v527_v47, 0.0  ;;  %v2238_v51 = vld [vmem:[%s3191_s5 + $0x38] sm:$0xff]  }
 0x10c   : > { %v620_v53 = vmax.f32 %v538_v50, 0.0  ;;  %2083 = vmatprep.subr.bf16.mxu0 %v2238_v51 }
 0x10d   : > { %v618_v55 = vmax.f32 %v530_v52, 0.0  ;;  %2084 = vmatpush3.bf16.msra.mxu0 %v2238_v51  ;;  %v2239_v52 = vld [vmem:[%s3193_s7] sm:$0xff]  }
 0x10e   : > { %v644_v56 = vpack.c.bf16 %v620_v53, %v619_v49  ;;  %2117 = vmatprep.subr.bf16.mxu0 %v2239_v52  ;;  %2165 = vmatprep.subr.bf16.mxu1 %v2239_v52  ;;  %v2241_v53 = vld [vmem:[%s3193_s7 + $0x10] sm:$0xff]  }
 0x10f   : > { %v643_v57 = vpack.c.bf16 %v618_v55, %v617_v54  ;;  %v2007_v58 = vpop.f32.mrb[16].mxu0  ;;  %2173 = vmatpush3.bf16.msra.mxu1 %v2239_v52  ;;  %v2694_v54 = vld [vmem:[%s3193_s7 + $0x18] sm:$0xff]   ;;  %v2700_v55 = vld [vmem:[%s3193_s7 + $0x20] sm:$0xff]  }
 0x110   : > { %v551_v59 = vadd.f32 %v2007_v58, %v2645_v1  ;;  %v542_v60 = vpop.f32.mrb[17].mxu0  ;;  %v2722_v58 = vld [vmem:[%s3190_s4] ss:$0 sm:$0xff] }
 0x111   : > { %v543_v61 = vadd.f32 %v2645_v1, %v542_v60  ;;  %v2008_v62 = vpop.f32.mrb[18].mxu0  ;;  %2049 = vmatprep.mubr.bf16.mxu1 %v643_v57  ;;  %v2714_v57 = vld [vmem:[%s3193_s7 + $0x30] sm:$0xff]  }
 0x112   : > { %v623_v63 = vmax.f32 %v551_v59, 0.0  ;;  %v554_v0 = vadd.f32 %v2008_v62, %v2645_v1  ;;  %v545_v2 = vpop.f32.mrb[19].mxu0  ;;  %2050 = vmatmul.mubr.bf16.gmra.mrb[12].mxu1 %v644_v56  ;;  %v2707_v56 = vld [vmem:[%s3193_s7 + $0x28] sm:$0xff]  }
 0x113   : > { %v546_v3 = vadd.f32 %v2645_v1, %v545_v2  ;;  %v621_v5 = vmax.f32 %v543_v61, 0.0 }
 0x114   : > { %v624_v4 = vmax.f32 %v554_v0, 0.0 }
 0x115   : > { %v622_v6 = vmax.f32 %v546_v3, 0.0 }
 0x116   : > { %v646_v7 = vpack.c.bf16 %v624_v4, %v623_v63 }
 0x117   : > { %v645_v8 = vpack.c.bf16 %v622_v6, %v621_v5  ;;  %v2011_v9 = vpop.f32.mrb[20].mxu0 }
 0x118   : > { %v567_v10 = vadd.f32 %v2011_v9, %v2645_v1  ;;  %v558_v11 = vpop.f32.mrb[21].mxu0 }
 0x119   : > { %v559_v12 = vadd.f32 %v2645_v1, %v558_v11  ;;  %v2012_v13 = vpop.f32.mrb[22].mxu0  ;;  %2053 = vmatprep.mubr.bf16.mxu1 %v645_v8 }
 0x11a   : > { %v627_v14 = vmax.f32 %v567_v10, 0.0  ;;  %v570_v15 = vadd.f32 %v2012_v13, %v2645_v1  ;;  %v561_v16 = vpop.f32.mrb[23].mxu0  ;;  %2054 = vmatmul.mubr.bf16.gmra.mrb[16].mxu1 %v646_v7 }
 0x11b   : > { %v562_v17 = vadd.f32 %v2645_v1, %v561_v16  ;;  %v625_v19 = vmax.f32 %v559_v12, 0.0 }
 0x11c   : > { %v628_v18 = vmax.f32 %v570_v15, 0.0 }
 0x11d   : > { %v626_v20 = vmax.f32 %v562_v17, 0.0 }
 0x11e   : > { %v648_v21 = vpack.c.bf16 %v628_v18, %v627_v14 }
 0x11f   : > { %v647_v22 = vpack.c.bf16 %v626_v20, %v625_v19  ;;  %v2015_v23 = vpop.f32.mrb[24].mxu0 }
 0x120   : > { %v583_v24 = vadd.f32 %v2015_v23, %v2645_v1  ;;  %v574_v25 = vpop.f32.mrb[25].mxu0 }
 0x121   : > { %v575_v26 = vadd.f32 %v2645_v1, %v574_v25  ;;  %v2016_v27 = vpop.f32.mrb[26].mxu0  ;;  %2057 = vmatprep.mubr.bf16.mxu1 %v647_v22 }
 0x122   : > { %v631_v28 = vmax.f32 %v583_v24, 0.0  ;;  %v586_v29 = vadd.f32 %v2016_v27, %v2645_v1  ;;  %v577_v30 = vpop.f32.mrb[27].mxu0  ;;  %2058 = vmatmul.mubr.bf16.gmra.mrb[20].mxu1 %v648_v21 }
 0x123   : > { %v578_v31 = vadd.f32 %v2645_v1, %v577_v30  ;;  %v629_v33 = vmax.f32 %v575_v26, 0.0 }
 0x124   : > { %v632_v32 = vmax.f32 %v586_v29, 0.0 }
 0x125   : > { %v630_v34 = vmax.f32 %v578_v31, 0.0 }
 0x126   : > { %v650_v35 = vpack.c.bf16 %v632_v32, %v631_v28 }
 0x127   : > { %v649_v36 = vpack.c.bf16 %v630_v34, %v629_v33  ;;  %v2019_v37 = vpop.f32.mrb[28].mxu0 }
 0x128   : > { %v599_v38 = vadd.f32 %v2019_v37, %v2645_v1  ;;  %v590_v39 = vpop.f32.mrb[29].mxu0 }
 0x129   : > { %v591_v40 = vadd.f32 %v2645_v1, %v590_v39  ;;  %v2020_v41 = vpop.f32.mrb[30].mxu0  ;;  %2061 = vmatprep.mubr.bf16.mxu1 %v649_v36 }
 0x12a   : > { %v635_v42 = vmax.f32 %v599_v38, 0.0  ;;  %v602_v43 = vadd.f32 %v2020_v41, %v2645_v1  ;;  %v593_v44 = vpop.f32.mrb[31].mxu0  ;;  %2062 = vmatmul.mubr.bf16.gmra.mrb[24].mxu1 %v650_v35 }
 0x12b   : > { %v594_v45 = vadd.f32 %v2645_v1, %v593_v44  ;;  %v633_v47 = vmax.f32 %v591_v40, 0.0  ;;  %v2240_v1 = vld [vmem:[%s3193_s7 + $0x8] sm:$0xff]  }
 0x12c   : > { %v636_v46 = vmax.f32 %v602_v43, 0.0  ;;  %2166 = vmatprep.subr.bf16.mxu1 %v2240_v1 }
 0x12d   : > { %v634_v48 = vmax.f32 %v594_v45, 0.0  ;;  %2174 = vmatpush3.bf16.msra.mxu1 %v2240_v1 }
 0x12e   : > { %v652_v49 = vpack.c.bf16 %v636_v46, %v635_v42  ;;  %2167 = vmatprep.subr.bf16.mxu1 %v2241_v53 }
 0x12f   : > { %v651_v50 = vpack.c.bf16 %v634_v48, %v633_v47 }
 0x131   : > { %2065 = vmatprep.mubr.bf16.mxu1 %v651_v50  ;;  %2175 = vmatpush3.bf16.msra.mxu1 %v2241_v53 }
 0x132   : > { %2066 = vmatmul.mubr.bf16.gmra.mrb[28].mxu1 %v652_v49  ;;  %2168 = vmatprep.subr.bf16.mxu1 %v2694_v54 }
 0x135   : > { %2176 = vmatpush3.bf16.msra.mxu1 %v2694_v54 }
 0x136   : > { %2169 = vmatprep.subr.bf16.mxu1 %v2700_v55 }
 0x139   : > { %2177 = vmatpush3.bf16.msra.mxu1 %v2700_v55 }
 0x13a   : > { %2170 = vmatprep.subr.bf16.mxu1 %v2707_v56 }
 0x13d   : > { %2178 = vmatpush3.bf16.msra.mxu1 %v2707_v56 }
 0x13e   : > { %2171 = vmatprep.subr.bf16.mxu1 %v2714_v57 }
 0x141   : > { %2179 = vmatpush3.bf16.msra.mxu1 %v2714_v57 }
 0x1cd   : > { %v2039_v59 = vpop.f32.mrb[0].mxu1 }
 0x1ce   : > { %v767_v60 = vadd.f32 %v2039_v59, %v2722_v58  ;;  %v758_v61 = vpop.f32.mrb[1].mxu1 }
 0x1cf   : > { %v759_v62 = vadd.f32 %v2722_v58, %v758_v61  ;;  %v2040_v63 = vpop.f32.mrb[2].mxu1 }
 0x1d0   : > { %v770_v0 = vadd.f32 %v2040_v63, %v2722_v58  ;;  %v761_v2 = vpop.f32.mrb[3].mxu1  ;;  %v887_v4 = vmax.f32 %v767_v60, 0.0 }
 0x1d1   : > { %v762_v3 = vadd.f32 %v2722_v58, %v761_v2  ;;  %v885_v6 = vmax.f32 %v759_v62, 0.0 }
 0x1d2   : > { %v888_v5 = vmax.f32 %v770_v0, 0.0 }
 0x1d3   : > { %v886_v7 = vmax.f32 %v762_v3, 0.0 }
 0x1d4   : > { %v918_v8 = vpack.c.bf16 %v888_v5, %v887_v4 }
 0x1d5   : > { %v917_v9 = vpack.c.bf16 %v886_v7, %v885_v6  ;;  %v2043_v10 = vpop.f32.mrb[4].mxu1 }
 0x1d6   : > { %v783_v11 = vadd.f32 %v2043_v10, %v2722_v58  ;;  %v774_v12 = vpop.f32.mrb[5].mxu1 }
 0x1d7   : > { %v775_v13 = vadd.f32 %v2722_v58, %v774_v12  ;;  %v2044_v14 = vpop.f32.mrb[6].mxu1  ;;  %2085 = vmatprep.mubr.bf16.mxu0 %v917_v9 }
 0x1d8   : > { %v786_v15 = vadd.f32 %v2044_v14, %v2722_v58  ;;  %v777_v16 = vpop.f32.mrb[7].mxu1  ;;  %2086 = vmatmul.mubr.bf16.vlgmr.msra.gmra.mrb[32].mxu0 %v918_v8  ;;  %v891_v18 = vmax.f32 %v783_v11, 0.0 }
 0x1d9   : > { %v778_v17 = vadd.f32 %v2722_v58, %v777_v16  ;;  %2118 = vmatpush3.bf16.msra.mxu0 %v2239_v52  ;;  %v889_v20 = vmax.f32 %v775_v13, 0.0 }
 0x1da   : > { %v892_v19 = vmax.f32 %v786_v15, 0.0  ;;  %2119 = vmatprep.subr.bf16.mxu0 %v2240_v1 }
 0x1db   : > { %v890_v21 = vmax.f32 %v778_v17, 0.0 }
 0x1dc   : > { %v920_v22 = vpack.c.bf16 %v892_v19, %v891_v18 }
 0x1dd   : > { %v919_v23 = vpack.c.bf16 %v890_v21, %v889_v20  ;;  %v2047_v24 = vpop.f32.mrb[8].mxu1  ;;  %2120 = vmatpush3.bf16.msra.mxu0 %v2240_v1 }
 0x1de   : > { %v799_v25 = vadd.f32 %v2047_v24, %v2722_v58  ;;  %v790_v26 = vpop.f32.mrb[9].mxu1  ;;  %2121 = vmatprep.subr.bf16.mxu0 %v2241_v53 }
 0x1df   : > { %v791_v27 = vadd.f32 %v2722_v58, %v790_v26  ;;  %v2048_v28 = vpop.f32.mrb[10].mxu1  ;;  %2089 = vmatprep.mubr.bf16.mxu0 %v919_v23 }
 0x1e0   : > { %v802_v29 = vadd.f32 %v2048_v28, %v2722_v58  ;;  %v793_v30 = vpop.f32.mrb[11].mxu1  ;;  %2090 = vmatmul.mubr.bf16.gmra.mrb[36].mxu0 %v920_v22  ;;  %v895_v32 = vmax.f32 %v799_v25, 0.0 }
 0x1e1   : > { %v794_v31 = vadd.f32 %v2722_v58, %v793_v30  ;;  %2122 = vmatpush3.bf16.msra.mxu0 %v2241_v53  ;;  %v893_v34 = vmax.f32 %v791_v27, 0.0 }
 0x1e2   : > { %v896_v33 = vmax.f32 %v802_v29, 0.0  ;;  %2123 = vmatprep.subr.bf16.mxu0 %v2694_v54 }
 0x1e3   : > { %v894_v35 = vmax.f32 %v794_v31, 0.0 }
 0x1e4   : > { %v922_v36 = vpack.c.bf16 %v896_v33, %v895_v32 }
 0x1e5   : > { %v921_v37 = vpack.c.bf16 %v894_v35, %v893_v34  ;;  %v2051_v38 = vpop.f32.mrb[12].mxu1  ;;  %2124 = vmatpush3.bf16.msra.mxu0 %v2694_v54 }
 0x1e6   : > { %v815_v39 = vadd.f32 %v2051_v38, %v2722_v58  ;;  %v806_v40 = vpop.f32.mrb[13].mxu1  ;;  %2125 = vmatprep.subr.bf16.mxu0 %v2700_v55 }
 0x1e7   : > { %v807_v41 = vadd.f32 %v2722_v58, %v806_v40  ;;  %v2052_v42 = vpop.f32.mrb[14].mxu1  ;;  %2093 = vmatprep.mubr.bf16.mxu0 %v921_v37 }
 0x1e8   : > { %v818_v43 = vadd.f32 %v2052_v42, %v2722_v58  ;;  %v809_v44 = vpop.f32.mrb[15].mxu1  ;;  %2094 = vmatmul.mubr.bf16.gmra.mrb[40].mxu0 %v922_v36  ;;  %v899_v46 = vmax.f32 %v815_v39, 0.0 }
 0x1e9   : > { %v810_v45 = vadd.f32 %v2722_v58, %v809_v44  ;;  %2126 = vmatpush3.bf16.msra.mxu0 %v2700_v55  ;;  %v897_v48 = vmax.f32 %v807_v41, 0.0 }
 0x1ea   : > { %v900_v47 = vmax.f32 %v818_v43, 0.0  ;;  %2127 = vmatprep.subr.bf16.mxu0 %v2707_v56 }
 0x1eb   : > { %v898_v49 = vmax.f32 %v810_v45, 0.0  ;;  %v2246_v45 = vld [vmem:[%s3193_s7 + $0x38] sm:$0xff]  }
 0x1ec   : > { %v924_v50 = vpack.c.bf16 %v900_v47, %v899_v46  ;;  %2172 = vmatprep.subr.bf16.mxu1 %v2246_v45 }
 0x1ed   : > { %v923_v51 = vpack.c.bf16 %v898_v49, %v897_v48  ;;  %v2055_v52 = vpop.f32.mrb[16].mxu1  ;;  %2128 = vmatpush3.bf16.msra.mxu0 %v2707_v56  ;;  %2180 = vmatpush3.bf16.msra.mxu1 %v2246_v45 }
 0x1ee   : > { %v831_v1 = vadd.f32 %v2055_v52, %v2722_v58  ;;  %v822_v53 = vpop.f32.mrb[17].mxu1  ;;  %2129 = vmatprep.subr.bf16.mxu0 %v2714_v57 }
 0x1ef   : > { %v823_v54 = vadd.f32 %v2722_v58, %v822_v53  ;;  %v2056_v59 = vpop.f32.mrb[18].mxu1  ;;  %2097 = vmatprep.mubr.bf16.mxu0 %v923_v51 }
 0x1f0   : > { %v834_v55 = vadd.f32 %v2056_v59, %v2722_v58  ;;  %v825_v60 = vpop.f32.mrb[19].mxu1  ;;  %2098 = vmatmul.mubr.bf16.gmra.mrb[44].mxu0 %v924_v50  ;;  %v903_v62 = vmax.f32 %v831_v1, 0.0 }
 0x1f1   : > { %v826_v61 = vadd.f32 %v2722_v58, %v825_v60  ;;  %2130 = vmatpush3.bf16.msra.mxu0 %v2714_v57  ;;  %v901_v56 = vmax.f32 %v823_v54, 0.0 }
 0x1f2   : > { %v904_v63 = vmax.f32 %v834_v55, 0.0  ;;  %2131 = vmatprep.subr.bf16.mxu0 %v2246_v45 }
 0x1f3   : > { %v902_v0 = vmax.f32 %v826_v61, 0.0 }
 0x1f4   : > { %v926_v2 = vpack.c.bf16 %v904_v63, %v903_v62 }
 0x1f5   : > { %v925_v3 = vpack.c.bf16 %v902_v0, %v901_v56  ;;  %v2059_v4 = vpop.f32.mrb[20].mxu1  ;;  %2132 = vmatpush3.bf16.msra.mxu0 %v2246_v45 }
 0x1f6   : > { %v847_v5 = vadd.f32 %v2059_v4, %v2722_v58  ;;  %v838_v6 = vpop.f32.mrb[21].mxu1 }
 0x1f7   : > { %v839_v7 = vadd.f32 %v2722_v58, %v838_v6  ;;  %v2060_v8 = vpop.f32.mrb[22].mxu1  ;;  %2101 = vmatprep.mubr.bf16.mxu0 %v925_v3 }
 0x1f8   : > { %v850_v9 = vadd.f32 %v2060_v8, %v2722_v58  ;;  %v841_v10 = vpop.f32.mrb[23].mxu1  ;;  %2102 = vmatmul.mubr.bf16.gmra.mrb[48].mxu0 %v926_v2  ;;  %v907_v11 = vmax.f32 %v847_v5, 0.0 }
 0x1f9   : > { %v842_v57 = vadd.f32 %v2722_v58, %v841_v10  ;;  %v905_v13 = vmax.f32 %v839_v7, 0.0 }
 0x1fa   : > { %v908_v12 = vmax.f32 %v850_v9, 0.0 }
 0x1fb   : > { %v906_v14 = vmax.f32 %v842_v57, 0.0 }
 0x1fc   : > { %v928_v15 = vpack.c.bf16 %v908_v12, %v907_v11 }
 0x1fd   : > { %v927_v16 = vpack.c.bf16 %v906_v14, %v905_v13  ;;  %v2063_v17 = vpop.f32.mrb[24].mxu1 }
 0x1fe   : > { %v863_v18 = vadd.f32 %v2063_v17, %v2722_v58  ;;  %v854_v19 = vpop.f32.mrb[25].mxu1 }
 0x1ff   : > { %v855_v20 = vadd.f32 %v2722_v58, %v854_v19  ;;  %v2064_v21 = vpop.f32.mrb[26].mxu1  ;;  %2105 = vmatprep.mubr.bf16.mxu0 %v927_v16 }
 0x200   : > { %v866_v22 = vadd.f32 %v2064_v21, %v2722_v58  ;;  %v857_v23 = vpop.f32.mrb[27].mxu1  ;;  %2106 = vmatmul.mubr.bf16.gmra.mrb[52].mxu0 %v928_v15  ;;  %v911_v25 = vmax.f32 %v863_v18, 0.0 }
 0x201   : > { %v858_v24 = vadd.f32 %v2722_v58, %v857_v23  ;;  %v909_v27 = vmax.f32 %v855_v20, 0.0 }
 0x202   : > { %v912_v26 = vmax.f32 %v866_v22, 0.0 }
 0x203   : > { %v910_v28 = vmax.f32 %v858_v24, 0.0 }
 0x204   : > { %v930_v29 = vpack.c.bf16 %v912_v26, %v911_v25 }
 0x205   : > { %v929_v30 = vpack.c.bf16 %v910_v28, %v909_v27  ;;  %v2067_v31 = vpop.f32.mrb[28].mxu1 }
 0x206   : > { %v879_v32 = vadd.f32 %v2067_v31, %v2722_v58  ;;  %v870_v33 = vpop.f32.mrb[29].mxu1 }
 0x207   : > { %v871_v34 = vadd.f32 %v2722_v58, %v870_v33  ;;  %v2068_v35 = vpop.f32.mrb[30].mxu1  ;;  %2109 = vmatprep.mubr.bf16.mxu0 %v929_v30 }
 0x208   : > { %v882_v36 = vadd.f32 %v2068_v35, %v2722_v58  ;;  %v873_v37 = vpop.f32.mrb[31].mxu1  ;;  %2110 = vmatmul.mubr.bf16.gmra.mrb[56].mxu0 %v930_v29  ;;  %v915_v39 = vmax.f32 %v879_v32, 0.0 }
 0x209   : > { %v874_v38 = vadd.f32 %v2722_v58, %v873_v37  ;;  %v913_v41 = vmax.f32 %v871_v34, 0.0  ;;  %v2770_v58 = vld [vmem:[%s3192_s6] ss:$0 sm:$0xff] }
 0x20a   : > { %v916_v40 = vmax.f32 %v882_v36, 0.0 }
 0x20b   : > { %v914_v42 = vmax.f32 %v874_v38, 0.0 }
 0x20c   : > { %v932_v43 = vpack.c.bf16 %v916_v40, %v915_v39 }
 0x20d   : > { %v931_v44 = vpack.c.bf16 %v914_v42, %v913_v41 }
 0x20f   : > { %2113 = vmatprep.mubr.bf16.mxu0 %v931_v44 }
 0x210   : > { %2114 = vmatmul.mubr.bf16.gmra.mrb[60].mxu0 %v932_v43 }
 0x2ab   : > { %v2087_v46 = vpop.f32.mrb[32].mxu0 }
 0x2ac   : > { %v1047_v47 = vadd.f32 %v2087_v46, %v2770_v58  ;;  %v1038_v48 = vpop.f32.mrb[33].mxu0 }
 0x2ad   : > { %v1039_v49 = vadd.f32 %v2770_v58, %v1038_v48  ;;  %v2088_v50 = vpop.f32.mrb[34].mxu0 }
 0x2ae   : > { %v1050_v51 = vadd.f32 %v2088_v50, %v2770_v58  ;;  %v1041_v52 = vpop.f32.mrb[35].mxu0  ;;  %v1167_v53 = vmax.f32 %v1047_v47, 0.0 }
 0x2af   : > { %v1042_v1 = vadd.f32 %v2770_v58, %v1041_v52  ;;  %v1165_v59 = vmax.f32 %v1039_v49, 0.0 }
 0x2b0   : > { %v1168_v54 = vmax.f32 %v1050_v51, 0.0 }
 0x2b1   : > { %v1166_v55 = vmax.f32 %v1042_v1, 0.0 }
 0x2b2   : > { %v1198_v60 = vpack.c.bf16 %v1168_v54, %v1167_v53 }
 0x2b3   : > { %v1197_v61 = vpack.c.bf16 %v1166_v55, %v1165_v59  ;;  %v2091_v62 = vpop.f32.mrb[36].mxu0 }
 0x2b4   : > { %v1063_v63 = vadd.f32 %v2091_v62, %v2770_v58  ;;  %v1054_v56 = vpop.f32.mrb[37].mxu0 }
 0x2b5   : > { %v1055_v0 = vadd.f32 %v2770_v58, %v1054_v56  ;;  %v2092_v2 = vpop.f32.mrb[38].mxu0  ;;  %2133 = vmatprep.mubr.bf16.mxu0 %v1197_v61 }
 0x2b6   : > { %v1066_v3 = vadd.f32 %v2092_v2, %v2770_v58  ;;  %v1057_v4 = vpop.f32.mrb[39].mxu0  ;;  %2134 = vmatmul.mubr.bf16.vlgmr.msra.gmra.mrb[64].mxu0 %v1198_v60  ;;  %v1171_v6 = vmax.f32 %v1063_v63, 0.0 }
 0x2b7   : > { %v1058_v5 = vadd.f32 %v2770_v58, %v1057_v4  ;;  %v1169_v8 = vmax.f32 %v1055_v0, 0.0 }
 0x2b8   : > { %v1172_v7 = vmax.f32 %v1066_v3, 0.0 }
 0x2b9   : > { %v1170_v9 = vmax.f32 %v1058_v5, 0.0 }
 0x2ba   : > { %v1200_v10 = vpack.c.bf16 %v1172_v7, %v1171_v6 }
 0x2bb   : > { %v1199_v57 = vpack.c.bf16 %v1170_v9, %v1169_v8  ;;  %v2095_v11 = vpop.f32.mrb[40].mxu0 }
 0x2bc   : > { %v1079_v12 = vadd.f32 %v2095_v11, %v2770_v58  ;;  %v1070_v13 = vpop.f32.mrb[41].mxu0 }
 0x2bd   : > { %v1071_v14 = vadd.f32 %v2770_v58, %v1070_v13  ;;  %v2096_v15 = vpop.f32.mrb[42].mxu0  ;;  %2137 = vmatprep.mubr.bf16.mxu1 %v1199_v57 }
 0x2be   : > { %v1082_v16 = vadd.f32 %v2096_v15, %v2770_v58  ;;  %v1073_v17 = vpop.f32.mrb[43].mxu0  ;;  %2138 = vmatmul.mubr.bf16.vlgmr.msra.gmra.mrb[32].mxu1 %v1200_v10  ;;  %v1175_v19 = vmax.f32 %v1079_v12, 0.0 }
 0x2bf   : > { %v1074_v18 = vadd.f32 %v2770_v58, %v1073_v17  ;;  %v1173_v21 = vmax.f32 %v1071_v14, 0.0 }
 0x2c0   : > { %v1176_v20 = vmax.f32 %v1082_v16, 0.0 }
 0x2c1   : > { %v1174_v22 = vmax.f32 %v1074_v18, 0.0 }
 0x2c2   : > { %v1202_v23 = vpack.c.bf16 %v1176_v20, %v1175_v19 }
 0x2c3   : > { %v1201_v24 = vpack.c.bf16 %v1174_v22, %v1173_v21  ;;  %v2099_v25 = vpop.f32.mrb[44].mxu0 }
 0x2c4   : > { %v1095_v26 = vadd.f32 %v2099_v25, %v2770_v58  ;;  %v1086_v27 = vpop.f32.mrb[45].mxu0 }
 0x2c5   : > { %v1087_v28 = vadd.f32 %v2770_v58, %v1086_v27  ;;  %v2100_v29 = vpop.f32.mrb[46].mxu0  ;;  %2141 = vmatprep.mubr.bf16.mxu1 %v1201_v24 }
 0x2c6   : > { %v1098_v30 = vadd.f32 %v2100_v29, %v2770_v58  ;;  %v1089_v31 = vpop.f32.mrb[47].mxu0  ;;  %2142 = vmatmul.mubr.bf16.gmra.mrb[36].mxu1 %v1202_v23  ;;  %v1179_v33 = vmax.f32 %v1095_v26, 0.0 }
 0x2c7   : > { %v1090_v32 = vadd.f32 %v2770_v58, %v1089_v31  ;;  %v1177_v35 = vmax.f32 %v1087_v28, 0.0 }
 0x2c8   : > { %v1180_v34 = vmax.f32 %v1098_v30, 0.0 }
 0x2c9   : > { %v1178_v36 = vmax.f32 %v1090_v32, 0.0  ;;  %v2807_v32 = vld [vmem:[%s3194_s8] ss:$0 sm:$0xff] }
 0x2ca   : > { %v1204_v37 = vpack.c.bf16 %v1180_v34, %v1179_v33 }
 0x2cb   : > { %v1203_v38 = vpack.c.bf16 %v1178_v36, %v1177_v35  ;;  %v2103_v39 = vpop.f32.mrb[48].mxu0 }
 0x2cc   : > { %v1111_v40 = vadd.f32 %v2103_v39, %v2770_v58  ;;  %v1102_v41 = vpop.f32.mrb[49].mxu0 }
 0x2cd   : > { %v1103_v42 = vadd.f32 %v2770_v58, %v1102_v41  ;;  %v2104_v43 = vpop.f32.mrb[50].mxu0  ;;  %2145 = vmatprep.mubr.bf16.mxu1 %v1203_v38 }
 0x2ce   : > { %v1114_v44 = vadd.f32 %v2104_v43, %v2770_v58  ;;  %v1105_v45 = vpop.f32.mrb[51].mxu0  ;;  %2146 = vmatmul.mubr.bf16.gmra.mrb[40].mxu1 %v1204_v37  ;;  %v1183_v47 = vmax.f32 %v1111_v40, 0.0 }
 0x2cf   : > { %v1106_v46 = vadd.f32 %v2770_v58, %v1105_v45  ;;  %v1181_v49 = vmax.f32 %v1103_v42, 0.0 }
 0x2d0   : > { %v1184_v48 = vmax.f32 %v1114_v44, 0.0 }
 0x2d1   : > { %v1182_v50 = vmax.f32 %v1106_v46, 0.0 }
 0x2d2   : > { %v1206_v51 = vpack.c.bf16 %v1184_v48, %v1183_v47 }
 0x2d3   : > { %v1205_v52 = vpack.c.bf16 %v1182_v50, %v1181_v49  ;;  %v2107_v1 = vpop.f32.mrb[52].mxu0 }
 0x2d4   : > { %v1127_v53 = vadd.f32 %v2107_v1, %v2770_v58  ;;  %v1118_v54 = vpop.f32.mrb[53].mxu0 }
 0x2d5   : > { %v1119_v59 = vadd.f32 %v2770_v58, %v1118_v54  ;;  %v2108_v55 = vpop.f32.mrb[54].mxu0  ;;  %2149 = vmatprep.mubr.bf16.mxu1 %v1205_v52 }
 0x2d6   : > { %v1130_v60 = vadd.f32 %v2108_v55, %v2770_v58  ;;  %v1121_v61 = vpop.f32.mrb[55].mxu0  ;;  %2150 = vmatmul.mubr.bf16.gmra.mrb[44].mxu1 %v1206_v51  ;;  %v1187_v63 = vmax.f32 %v1127_v53, 0.0 }
 0x2d7   : > { %v1122_v62 = vadd.f32 %v2770_v58, %v1121_v61  ;;  %v1185_v0 = vmax.f32 %v1119_v59, 0.0 }
 0x2d8   : > { %v1188_v56 = vmax.f32 %v1130_v60, 0.0 }
 0x2d9   : > { %v1186_v2 = vmax.f32 %v1122_v62, 0.0 }
 0x2da   : > { %v1208_v3 = vpack.c.bf16 %v1188_v56, %v1187_v63 }
 0x2db   : > { %v1207_v4 = vpack.c.bf16 %v1186_v2, %v1185_v0  ;;  %v2111_v5 = vpop.f32.mrb[56].mxu0 }
 0x2dc   : > { %v1143_v6 = vadd.f32 %v2111_v5, %v2770_v58  ;;  %v1134_v7 = vpop.f32.mrb[57].mxu0 }
 0x2dd   : > { %v1135_v8 = vadd.f32 %v2770_v58, %v1134_v7  ;;  %v2112_v9 = vpop.f32.mrb[58].mxu0  ;;  %2153 = vmatprep.mubr.bf16.mxu1 %v1207_v4 }
 0x2de   : > { %v1146_v10 = vadd.f32 %v2112_v9, %v2770_v58  ;;  %v1137_v57 = vpop.f32.mrb[59].mxu0  ;;  %2154 = vmatmul.mubr.bf16.gmra.mrb[48].mxu1 %v1208_v3  ;;  %v1191_v12 = vmax.f32 %v1143_v6, 0.0 }
 0x2df   : > { %v1138_v11 = vadd.f32 %v2770_v58, %v1137_v57  ;;  %v1189_v14 = vmax.f32 %v1135_v8, 0.0 }
 0x2e0   : > { %v1192_v13 = vmax.f32 %v1146_v10, 0.0 }
 0x2e1   : > { %v1190_v15 = vmax.f32 %v1138_v11, 0.0 }
 0x2e2   : > { %v1210_v16 = vpack.c.bf16 %v1192_v13, %v1191_v12 }
 0x2e3   : > { %v1209_v17 = vpack.c.bf16 %v1190_v15, %v1189_v14  ;;  %v2115_v18 = vpop.f32.mrb[60].mxu0 }
 0x2e4   : > { %v1159_v19 = vadd.f32 %v2115_v18, %v2770_v58  ;;  %v1150_v20 = vpop.f32.mrb[61].mxu0 }
 0x2e5   : > { %v1151_v21 = vadd.f32 %v2770_v58, %v1150_v20  ;;  %v2116_v22 = vpop.f32.mrb[62].mxu0  ;;  %2157 = vmatprep.mubr.bf16.mxu1 %v1209_v17 }
 0x2e6   : > { %v1162_v23 = vadd.f32 %v2116_v22, %v2770_v58  ;;  %v1153_v24 = vpop.f32.mrb[63].mxu0  ;;  %2158 = vmatmul.mubr.bf16.gmra.mrb[52].mxu1 %v1210_v16  ;;  %v1195_v26 = vmax.f32 %v1159_v19, 0.0 }
 0x2e7   : > { %v1154_v25 = vadd.f32 %v2770_v58, %v1153_v24  ;;  %v1193_v28 = vmax.f32 %v1151_v21, 0.0 }
 0x2e8   : > { %v1196_v27 = vmax.f32 %v1162_v23, 0.0 }
 0x2e9   : > { %v1194_v29 = vmax.f32 %v1154_v25, 0.0 }
 0x2ea   : > { %v1212_v30 = vpack.c.bf16 %v1196_v27, %v1195_v26 }
 0x2eb   : > { %v1211_v31 = vpack.c.bf16 %v1194_v29, %v1193_v28 }
 0x2ed   : > { %2161 = vmatprep.mubr.bf16.mxu1 %v1211_v31 }
 0x2ee   : > { %2162 = vmatmul.mubr.bf16.gmra.mrb[56].mxu1 %v1212_v30 }
 0x389   : > { %v2135_v33 = vpop.f32.mrb[64].mxu0 }
 0x38a   : > { %v2810_v34 = vadd.f32 %v2135_v33, %v2807_v32  ;;  %v1318_v35 = vpop.f32.mrb[65].mxu0 }
 0x38b   : > { %v2813_v58 = vadd.f32 %v2807_v32, %v1318_v35  ;;  %v2136_v36 = vpop.f32.mrb[66].mxu0 }
 0x38c   : > { %1449 = vmax.xlane.f32.xlu1 %v2810_v34  ;;  %v1321_v37 = vpop.f32.mrb[67].mxu0  ;;  %v2818_v38 = vadd.f32 %v2136_v36, %v2807_v32 }
 0x38d   : > { %1445 = vmax.xlane.f32.xlu0 %v2813_v58  ;;  %v2821_v39 = vadd.f32 %v2807_v32, %v1321_v37 }
 0x390   : > { %1451 = vmax.xlane.f32.xlu1 %v2818_v38 }
 0x391   : > { %v2139_v40 = vpop.f32.mrb[32].mxu1  ;;  %1447 = vmax.xlane.f32.xlu0 %v2821_v39 }
 0x392   : > { %v2826_v41 = vadd.f32 %v2139_v40, %v2807_v32  ;;  %v1334_v42 = vpop.f32.mrb[33].mxu1 }
 0x393   : > { %v2140_v43 = vpop.f32.mrb[34].mxu1  ;;  %v2834_v46 = vadd.f32 %v2807_v32, %v1334_v42 }
 0x394   : > { %v2829_v44 = vadd.f32 %v2140_v43, %v2807_v32  ;;  %v1337_v45 = vpop.f32.mrb[35].mxu1 }
 0x395   : > { %1457 = vmax.xlane.f32.xlu0 %v2826_v41  ;;  %v2837_v47 = vadd.f32 %v2807_v32, %v1337_v45 }
 0x396   : > { %1459 = vmax.xlane.f32.xlu1 %v2829_v44 }
 0x399   : > { %v2143_v48 = vpop.f32.mrb[36].mxu1  ;;  %1453 = vmax.xlane.f32.xlu0 %v2834_v46 }
 0x39a   : > { %v2841_v49 = vadd.f32 %v2143_v48, %v2807_v32  ;;  %v1350_v50 = vpop.f32.mrb[37].mxu1  ;;  %1455 = vmax.xlane.f32.xlu1 %v2837_v47 }
 0x39b   : > { %v2144_v51 = vpop.f32.mrb[38].mxu1  ;;  %v2850_v53 = vadd.f32 %v2807_v32, %v1350_v50 }
 0x39c   : > { %v2845_v52 = vadd.f32 %v2144_v51, %v2807_v32  ;;  %v1353_v1 = vpop.f32.mrb[39].mxu1 }
 0x39d   : > { %1465 = vmax.xlane.f32.xlu0 %v2841_v49  ;;  %v2853_v54 = vadd.f32 %v2807_v32, %v1353_v1 }
 0x39e   : > { %1467 = vmax.xlane.f32.xlu1 %v2845_v52 }
 0x3a1   : > { %v2147_v59 = vpop.f32.mrb[40].mxu1  ;;  %1461 = vmax.xlane.f32.xlu0 %v2850_v53 }
 0x3a2   : > { %v2857_v55 = vadd.f32 %v2147_v59, %v2807_v32  ;;  %v1366_v60 = vpop.f32.mrb[41].mxu1  ;;  %1463 = vmax.xlane.f32.xlu1 %v2853_v54 }
 0x3a3   : > { %v2148_v61 = vpop.f32.mrb[42].mxu1  ;;  %v2866_v56 = vadd.f32 %v2807_v32, %v1366_v60 }
 0x3a4   : > { %v2861_v62 = vadd.f32 %v2148_v61, %v2807_v32  ;;  %v1369_v63 = vpop.f32.mrb[43].mxu1 }
 0x3a5   : > { %1473 = vmax.xlane.f32.xlu0 %v2857_v55  ;;  %v2869_v0 = vadd.f32 %v2807_v32, %v1369_v63 }
 0x3a6   : > { %1475 = vmax.xlane.f32.xlu1 %v2861_v62 }
 0x3a9   : > { %v2151_v2 = vpop.f32.mrb[44].mxu1  ;;  %1469 = vmax.xlane.f32.xlu0 %v2866_v56 }
 0x3aa   : > { %v2873_v3 = vadd.f32 %v2151_v2, %v2807_v32  ;;  %v1382_v4 = vpop.f32.mrb[45].mxu1  ;;  %1471 = vmax.xlane.f32.xlu1 %v2869_v0 }
 0x3ab   : > { %v2152_v5 = vpop.f32.mrb[46].mxu1  ;;  %v2882_v8 = vadd.f32 %v2807_v32, %v1382_v4 }
 0x3ac   : > { %v2877_v6 = vadd.f32 %v2152_v5, %v2807_v32  ;;  %v1385_v7 = vpop.f32.mrb[47].mxu1 }
 0x3ad   : > { %1481 = vmax.xlane.f32.xlu0 %v2873_v3  ;;  %v2885_v9 = vadd.f32 %v2807_v32, %v1385_v7 }
 0x3ae   : > { %1483 = vmax.xlane.f32.xlu1 %v2877_v6 }
 0x3b1   : > { %v2155_v10 = vpop.f32.mrb[48].mxu1  ;;  %1477 = vmax.xlane.f32.xlu0 %v2882_v8 }
 0x3b2   : > { %v2889_v57 = vadd.f32 %v2155_v10, %v2807_v32  ;;  %v1398_v11 = vpop.f32.mrb[49].mxu1  ;;  %1479 = vmax.xlane.f32.xlu1 %v2885_v9 }
 0x3b3   : > { %v2156_v12 = vpop.f32.mrb[50].mxu1  ;;  %v2898_v15 = vadd.f32 %v2807_v32, %v1398_v11 }
 0x3b4   : > { %v2893_v13 = vadd.f32 %v2156_v12, %v2807_v32  ;;  %v1401_v14 = vpop.f32.mrb[51].mxu1 }
 0x3b5   : > { %1489 = vmax.xlane.f32.xlu0 %v2889_v57  ;;  %v2901_v16 = vadd.f32 %v2807_v32, %v1401_v14 }
 0x3b6   : > { %1491 = vmax.xlane.f32.xlu1 %v2893_v13 }
 0x3b9   : > { %v2159_v17 = vpop.f32.mrb[52].mxu1  ;;  %1485 = vmax.xlane.f32.xlu0 %v2898_v15 }
 0x3ba   : > { %v2905_v18 = vadd.f32 %v2159_v17, %v2807_v32  ;;  %v1414_v19 = vpop.f32.mrb[53].mxu1  ;;  %1487 = vmax.xlane.f32.xlu1 %v2901_v16 }
 0x3bb   : > { %v2160_v20 = vpop.f32.mrb[54].mxu1  ;;  %v2914_v23 = vadd.f32 %v2807_v32, %v1414_v19 }
 0x3bc   : > { %v2909_v21 = vadd.f32 %v2160_v20, %v2807_v32  ;;  %v1417_v22 = vpop.f32.mrb[55].mxu1 }
 0x3bd   : > { %1497 = vmax.xlane.f32.xlu0 %v2905_v18  ;;  %v2917_v24 = vadd.f32 %v2807_v32, %v1417_v22 }
 0x3be   : > { %1499 = vmax.xlane.f32.xlu1 %v2909_v21 }
 0x3c1   : > { %v2163_v25 = vpop.f32.mrb[56].mxu1  ;;  %1493 = vmax.xlane.f32.xlu0 %v2914_v23 }
 0x3c2   : > { %v1430_v26 = vpop.f32.mrb[57].mxu1  ;;  %1495 = vmax.xlane.f32.xlu1 %v2917_v24  ;;  %v2929_v31 = vadd.f32 %v2163_v25, %v2807_v32 }
 0x3c3   : > { %v2922_v27 = vadd.f32 %v2807_v32, %v1430_v26  ;;  %v2164_v28 = vpop.f32.mrb[58].mxu1 }
 0x3c4   : > { %v1433_v29 = vpop.f32.mrb[59].mxu1  ;;  %v2933_v33 = vadd.f32 %v2164_v28, %v2807_v32 }
 0x3c5   : > { %v2925_v30 = vadd.f32 %v2807_v32, %v1433_v29  ;;  %1501 = vmax.xlane.f32.xlu0 %v2922_v27 }
 0x3c7   : > { %1503 = vmax.xlane.f32.xlu1 %v2925_v30 }
 0x3c9   : > { %1505 = vmax.xlane.f32.xlu0 %v2929_v31 }
 0x3cb   : > { %1507 = vmax.xlane.f32.xlu1 %v2933_v33 }
 0x419   : > { %v1450_v35 = vpop.xlane.xlu1 %1449 }
 0x41a   : > { %v1511_v36 = vsub.f32 %v2810_v34, %v1450_v35  ;;  %v1446_v37 = vpop.xlane.xlu0 %1445 }
 0x41b   : > { %v1509_v40 = vsub.f32 %v2813_v58, %v1446_v37 }
 0x41c   : > { %v1545_v42 = vmul.f32 1.442695, %v1511_v36 }
 0x41d   : > { %v1541_v43 = vmul.f32 1.442695, %v1509_v40  ;;  %v1452_v45 = vpop.xlane.xlu1 %1451 }
 0x41e   : > { %2247 = vpow2.f32 %v1545_v42  ;;  %v1512_v48 = vsub.f32 %v2818_v38, %v1452_v45  ;;  %v1448_v50 = vpop.xlane.xlu0 %1447 }
 0x41f   : > { %v1510_v32 = vsub.f32 %v2821_v39, %v1448_v50  ;;  %2249 = vpow2.f32 %v1541_v43 }
 0x420   : > { %v1547_v51 = vmul.f32 1.442695, %v1512_v48 }
 0x421   : > { %v1543_v1 = vmul.f32 1.442695, %v1510_v32 }
 0x422   : > { %2251 = vpow2.f32 %v1547_v51  ;;  %v1458_v59 = vpop.xlane.xlu0 %1457 }
 0x423   : > { %v1515_v60 = vsub.f32 %v2826_v41, %v1458_v59  ;;  %v1460_v34 = vpop.xlane.xlu1 %1459  ;;  %2253 = vpow2.f32 %v1543_v1 }
 0x424   : > { %v1516_v61 = vsub.f32 %v2829_v44, %v1460_v34 }
 0x425   : > { %v1553_v58 = vmul.f32 1.442695, %v1515_v60 }
 0x426   : > { %v1555_v63 = vmul.f32 1.442695, %v1516_v61  ;;  %v1454_v2 = vpop.xlane.xlu0 %1453 }
 0x427   : > { %2255 = vpow2.f32 %v1553_v58  ;;  %v1513_v38 = vsub.f32 %v2834_v46, %v1454_v2  ;;  %v1456_v4 = vpop.xlane.xlu1 %1455 }
 0x428   : > { %v2944_v5 = vpop.eup %2247  ;;  %v1514_v39 = vsub.f32 %v2837_v47, %v1456_v4  ;;  %2257 = vpow2.f32 %v1555_v63 }
 0x429   : > { %v1549_v7 = vmul.f32 1.442695, %v1513_v38  ;;  %1609 = vadd.xlane.f32.xlu0 %v2944_v5  ;;  %v2948_v11 = vpop.eup %2249 }
 0x42a   : > { %v1551_v41 = vmul.f32 1.442695, %v1514_v39  ;;  %v1466_v10 = vpop.xlane.xlu0 %1465 }
 0x42b   : > { %2259 = vpow2.f32 %v1549_v7  ;;  %v1519_v44 = vsub.f32 %v2841_v49, %v1466_v10  ;;  %v1468_v12 = vpop.xlane.xlu1 %1467 }
 0x42c   : > { %v2951_v14 = vpop.eup %2251  ;;  %v1520_v46 = vsub.f32 %v2845_v52, %v1468_v12  ;;  %2261 = vpow2.f32 %v1551_v41 }
 0x42d   : > { %v1561_v17 = vmul.f32 1.442695, %v1519_v44  ;;  %1611 = vadd.xlane.f32.xlu1 %v2951_v14  ;;  %1605 = vadd.xlane.f32.xlu0 %v2948_v11  ;;  %v2957_v25 = vpop.eup %2253 }
 0x42e   : > { %v1563_v47 = vmul.f32 1.442695, %v1520_v46  ;;  %v1462_v19 = vpop.xlane.xlu0 %1461 }
 0x42f   : > { %2263 = vpow2.f32 %v1561_v17  ;;  %v1517_v20 = vsub.f32 %v2850_v53, %v1462_v19  ;;  %v1464_v22 = vpop.xlane.xlu1 %1463 }
 0x430   : > { %v1518_v49 = vsub.f32 %v2853_v54, %v1464_v22  ;;  %2265 = vpow2.f32 %v1563_v47 }
 0x431   : > { %v2960_v26 = vpop.eup %2255  ;;  %v1557_v28 = vmul.f32 1.442695, %v1517_v20  ;;  %1607 = vadd.xlane.f32.xlu1 %v2957_v25 }
 0x432   : > { %v1559_v52 = vmul.f32 1.442695, %v1518_v49  ;;  %1617 = vadd.xlane.f32.xlu0 %v2960_v26  ;;  %v1474_v29 = vpop.xlane.xlu0 %1473  ;;  %v2965_v53 = vpop.eup %2257 }
 0x433   : > { %2267 = vpow2.f32 %v1557_v28  ;;  %v1523_v35 = vsub.f32 %v2857_v55, %v1474_v29  ;;  %v1476_v36 = vpop.xlane.xlu1 %1475 }
 0x434   : > { %v1524_v37 = vsub.f32 %v2861_v62, %v1476_v36  ;;  %2269 = vpow2.f32 %v1559_v52 }
 0x435   : > { %v2968_v40 = vpop.eup %2259  ;;  %v1569_v54 = vmul.f32 1.442695, %v1523_v35  ;;  %1619 = vadd.xlane.f32.xlu1 %v2965_v53 }
 0x436   : > { %v1571_v42 = vmul.f32 1.442695, %v1524_v37  ;;  %1613 = vadd.xlane.f32.xlu0 %v2968_v40  ;;  %v1470_v43 = vpop.xlane.xlu0 %1469  ;;  %v2973_v55 = vpop.eup %2261 }
 0x437   : > { %2271 = vpow2.f32 %v1569_v54  ;;  %v1521_v45 = vsub.f32 %v2866_v56, %v1470_v43  ;;  %v1472_v48 = vpop.xlane.xlu1 %1471 }
 0x438   : > { %v1522_v50 = vsub.f32 %v2869_v0, %v1472_v48  ;;  %2273 = vpow2.f32 %v1571_v42 }
 0x439   : > { %v2976_v32 = vpop.eup %2263  ;;  %v1565_v62 = vmul.f32 1.442695, %v1521_v45  ;;  %1615 = vadd.xlane.f32.xlu1 %v2973_v55 }
 0x43a   : > { %v1567_v51 = vmul.f32 1.442695, %v1522_v50  ;;  %1625 = vadd.xlane.f32.xlu0 %v2976_v32  ;;  %v1482_v1 = vpop.xlane.xlu0 %1481  ;;  %v2981_v56 = vpop.eup %2265 }
 0x43b   : > { %2275 = vpow2.f32 %v1565_v62  ;;  %v1527_v59 = vsub.f32 %v2873_v3, %v1482_v1  ;;  %v1484_v60 = vpop.xlane.xlu1 %1483 }
 0x43c   : > { %v1528_v34 = vsub.f32 %v2877_v6, %v1484_v60  ;;  %2277 = vpow2.f32 %v1567_v51 }
 0x43d   : > { %v2984_v61 = vpop.eup %2267  ;;  %v1577_v0 = vmul.f32 1.442695, %v1527_v59  ;;  %1627 = vadd.xlane.f32.xlu1 %v2981_v56 }
 0x43e   : > { %v1579_v58 = vmul.f32 1.442695, %v1528_v34  ;;  %1621 = vadd.xlane.f32.xlu0 %v2984_v61  ;;  %v1478_v63 = vpop.xlane.xlu0 %1477  ;;  %v2989_v3 = vpop.eup %2269 }
 0x43f   : > { %2279 = vpow2.f32 %v1577_v0  ;;  %v1525_v2 = vsub.f32 %v2882_v8, %v1478_v63  ;;  %v1480_v38 = vpop.xlane.xlu1 %1479 }
 0x440   : > { %v1526_v4 = vsub.f32 %v2885_v9, %v1480_v38  ;;  %2281 = vpow2.f32 %v1579_v58 }
 0x441   : > { %v2992_v39 = vpop.eup %2271  ;;  %v1573_v6 = vmul.f32 1.442695, %v1525_v2  ;;  %1623 = vadd.xlane.f32.xlu1 %v2989_v3 }
 0x442   : > { %v1575_v7 = vmul.f32 1.442695, %v1526_v4  ;;  %1633 = vadd.xlane.f32.xlu0 %v2992_v39  ;;  %v1490_v41 = vpop.xlane.xlu0 %1489  ;;  %v2997_v8 = vpop.eup %2273 }
 0x443   : > { %2283 = vpow2.f32 %v1573_v6  ;;  %v1531_v10 = vsub.f32 %v2889_v57, %v1490_v41  ;;  %v1492_v44 = vpop.xlane.xlu1 %1491 }
 0x444   : > { %v1532_v12 = vsub.f32 %v2893_v13, %v1492_v44  ;;  %2285 = vpow2.f32 %v1575_v7 }
 0x445   : > { %v3000_v46 = vpop.eup %2275  ;;  %v1585_v9 = vmul.f32 1.442695, %v1531_v10  ;;  %1635 = vadd.xlane.f32.xlu1 %v2997_v8 }
 0x446   : > { %v1587_v17 = vmul.f32 1.442695, %v1532_v12  ;;  %1629 = vadd.xlane.f32.xlu0 %v3000_v46  ;;  %v1486_v47 = vpop.xlane.xlu0 %1485  ;;  %v3005_v57 = vpop.eup %2277 }
 0x447   : > { %2287 = vpow2.f32 %v1585_v9  ;;  %v1529_v19 = vsub.f32 %v2898_v15, %v1486_v47  ;;  %v1488_v20 = vpop.xlane.xlu1 %1487 }
 0x448   : > { %v1530_v22 = vsub.f32 %v2901_v16, %v1488_v20  ;;  %2289 = vpow2.f32 %v1587_v17 }
 0x449   : > { %v3008_v49 = vpop.eup %2279  ;;  %v1581_v13 = vmul.f32 1.442695, %v1529_v19  ;;  %1631 = vadd.xlane.f32.xlu1 %v3005_v57 }
 0x44a   : > { %v1583_v28 = vmul.f32 1.442695, %v1530_v22  ;;  %1641 = vadd.xlane.f32.xlu0 %v3008_v49  ;;  %v1498_v52 = vpop.xlane.xlu0 %1497  ;;  %v3013_v15 = vpop.eup %2281 }
 0x44b   : > { %2291 = vpow2.f32 %v1581_v13  ;;  %v1535_v29 = vsub.f32 %v2905_v18, %v1498_v52  ;;  %v1500_v35 = vpop.xlane.xlu1 %1499 }
 0x44c   : > { %v1536_v36 = vsub.f32 %v2909_v21, %v1500_v35  ;;  %2293 = vpow2.f32 %v1583_v28 }
 0x44d   : > { %v3016_v37 = vpop.eup %2283  ;;  %v1593_v16 = vmul.f32 1.442695, %v1535_v29  ;;  %1643 = vadd.xlane.f32.xlu1 %v3013_v15 }
 0x44e   : > { %v1595_v54 = vmul.f32 1.442695, %v1536_v36  ;;  %1637 = vadd.xlane.f32.xlu0 %v3016_v37  ;;  %v1494_v42 = vpop.xlane.xlu0 %1493  ;;  %v3021_v18 = vpop.eup %2285 }
 0x44f   : > { %2295 = vpow2.f32 %v1593_v16  ;;  %v1533_v43 = vsub.f32 %v2914_v23, %v1494_v42  ;;  %v1496_v45 = vpop.xlane.xlu1 %1495 }
 0x450   : > { %v1534_v48 = vsub.f32 %v2917_v24, %v1496_v45  ;;  %2297 = vpow2.f32 %v1595_v54 }
 0x451   : > { %v3024_v50 = vpop.eup %2287  ;;  %v1589_v21 = vmul.f32 1.442695, %v1533_v43  ;;  %1639 = vadd.xlane.f32.xlu1 %v3021_v18 }
 0x452   : > { %v1591_v62 = vmul.f32 1.442695, %v1534_v48  ;;  %1649 = vadd.xlane.f32.xlu0 %v3024_v50  ;;  %v1502_v51 = vpop.xlane.xlu0 %1501  ;;  %v3029_v59 = vpop.eup %2289 }
 0x453   : > { %2299 = vpow2.f32 %v1589_v21  ;;  %v1537_v1 = vsub.f32 %v2922_v27, %v1502_v51 }
 0x454   : > { %v1504_v23 = vpop.xlane.xlu1 %1503  ;;  %2301 = vpow2.f32 %v1591_v62 }
 0x455   : > { %v3031_v60 = vpop.eup %2291  ;;  %v1597_v34 = vmul.f32 1.442695, %v1537_v1  ;;  %v1538_v24 = vsub.f32 %v2925_v30, %v1504_v23  ;;  %1651 = vadd.xlane.f32.xlu1 %v3029_v59 }
 0x456   : > { %1645 = vadd.xlane.f32.xlu0 %v3031_v60  ;;  %v1506_v0 = vpop.xlane.xlu0 %1505  ;;  %v3037_v2 = vpop.eup %2293 }
 0x457   : > { %2303 = vpow2.f32 %v1597_v34  ;;  %v1599_v58 = vmul.f32 1.442695, %v1538_v24  ;;  %v1539_v63 = vsub.f32 %v2929_v31, %v1506_v0 }
 0x458   : > { %v1508_v27 = vpop.xlane.xlu1 %1507 }
 0x459   : > { %v3039_v38 = vpop.eup %2295  ;;  %2305 = vpow2.f32 %v1599_v58  ;;  %v1601_v4 = vmul.f32 1.442695, %v1539_v63  ;;  %v1540_v6 = vsub.f32 %v2933_v33, %v1508_v27  ;;  %1647 = vadd.xlane.f32.xlu1 %v3037_v2 }
 0x45a   : > { %1657 = vadd.xlane.f32.xlu0 %v3039_v38  ;;  %v3044_v7 = vpop.eup %2297 }
 0x45b   : > { %2307 = vpow2.f32 %v1601_v4  ;;  %v1603_v30 = vmul.f32 1.442695, %v1540_v6 }
 0x45d   : > { %v3046_v41 = vpop.eup %2299  ;;  %2309 = vpow2.f32 %v1603_v30  ;;  %1659 = vadd.xlane.f32.xlu1 %v3044_v7 }
 0x45e   : > { %1653 = vadd.xlane.f32.xlu0 %v3046_v41  ;;  %v3050_v31 = vpop.eup %2301 }
 0x461   : > { %v3052_v10 = vpop.eup %2303  ;;  %1655 = vadd.xlane.f32.xlu1 %v3050_v31 }
 0x462   : > { %1661 = vadd.xlane.f32.xlu0 %v3052_v10 }
 0x463   : > { %v3056_v33 = vpop.eup %2305 }
 0x465   : > { %v3058_v44 = vpop.eup %2307  ;;  %1663 = vadd.xlane.f32.xlu1 %v3056_v33 }
 0x466   : > { %1665 = vadd.xlane.f32.xlu0 %v3058_v44 }
 0x467   : > { %v3062_v12 = vpop.eup %2309 }
 0x469   : > { %1667 = vadd.xlane.f32.xlu1 %v3062_v12 }
 0x4b6   : > { %v1610_v9 = vpop.xlane.xlu0 %1609 }
 0x4b7   : > { %2311 = vrcp.f32 %v1610_v9 }
 0x4ba   : > { %v1612_v17 = vpop.xlane.xlu1 %1611  ;;  %v1606_v47 = vpop.xlane.xlu0 %1605 }
 0x4bb   : > { %2313 = vrcp.f32 %v1612_v17 }
 0x4bc   : > { %2315 = vrcp.f32 %v1606_v47 }
 0x4be   : > { %v1608_v19 = vpop.xlane.xlu1 %1607 }
 0x4bf   : > { %2317 = vrcp.f32 %v1608_v19  ;;  %v1618_v20 = vpop.xlane.xlu0 %1617 }
 0x4c0   : > { %2319 = vrcp.f32 %v1618_v20 }
 0x4c1   : > { %v2312_v22 = vpop.eup %2311 }
 0x4c2   : > { %v1703_v13 = vmul.f32 %v2312_v22, %v2944_v5  ;;  %v1620_v28 = vpop.xlane.xlu1 %1619 }
 0x4c3   : > { %2321 = vrcp.f32 %v1620_v28  ;;  %v1614_v52 = vpop.xlane.xlu0 %1613 }
 0x4c4   : > { %1735 = vst [vmem:[%s3069_s26 + $0x10] sm:$0xff] %v1703_v13  ;;  %2323 = vrcp.f32 %v1614_v52 }
 0x4c5   : > { %v2314_v29 = vpop.eup %2313 }
 0x4c6   : > { %v2316_v35 = vpop.eup %2315  ;;  %v1704_v36 = vmul.f32 %v2314_v29, %v2951_v14  ;;  %v1616_v16 = vpop.xlane.xlu1 %1615 }
 0x4c7   : > { %v1701_v54 = vmul.f32 %v2316_v35, %v2948_v11  ;;  %2325 = vrcp.f32 %v1616_v16  ;;  %v1626_v5 = vpop.xlane.xlu0 %1625 }
 0x4c8   : > { %1736 = vst [vmem:[%s3069_s26 + $0x18] sm:$0xff] %v1704_v36  ;;  %2327 = vrcp.f32 %v1626_v5 }
 0x4c9   : > { %v2318_v42 = vpop.eup %2317  ;;  %1733 = vst [vmem:[%s3069_s26] sm:$0xff] %v1701_v54 }
 0x4ca   : > { %v2320_v43 = vpop.eup %2319  ;;  %v1702_v45 = vmul.f32 %v2318_v42, %v2957_v25  ;;  %v1628_v48 = vpop.xlane.xlu1 %1627 }
 0x4cb   : > { %v1707_v21 = vmul.f32 %v2320_v43, %v2960_v26  ;;  %2329 = vrcp.f32 %v1628_v48  ;;  %v1622_v14 = vpop.xlane.xlu0 %1621 }
 0x4cc   : > { %1734 = vst [vmem:[%s3069_s26 + $0x8] sm:$0xff] %v1702_v45  ;;  %2331 = vrcp.f32 %v1622_v14 }
 0x4cd   : > { %v2322_v11 = vpop.eup %2321  ;;  %1739 = vst [vmem:[%s3069_s26 + $0x30] sm:$0xff] %v1707_v21 }
 0x4ce   : > { %v2324_v62 = vpop.eup %2323  ;;  %v1708_v51 = vmul.f32 %v2322_v11, %v2965_v53  ;;  %v1624_v1 = vpop.xlane.xlu1 %1623 }
 0x4cf   : > { %v1705_v23 = vmul.f32 %v2324_v62, %v2968_v40  ;;  %2333 = vrcp.f32 %v1624_v1  ;;  %v1634_v25 = vpop.xlane.xlu0 %1633 }
 0x4d0   : > { %1740 = vst [vmem:[%s3069_s26 + $0x38] sm:$0xff] %v1708_v51  ;;  %2335 = vrcp.f32 %v1634_v25 }
 0x4d1   : > { %v2326_v26 = vpop.eup %2325  ;;  %1737 = vst [vmem:[%s3069_s26 + $0x20] sm:$0xff] %v1705_v23 }
 0x4d2   : > { %v2328_v34 = vpop.eup %2327  ;;  %v1706_v24 = vmul.f32 %v2326_v26, %v2973_v55  ;;  %v1636_v0 = vpop.xlane.xlu1 %1635 }
 0x4d3   : > { %v1711_v58 = vmul.f32 %v2328_v34, %v2976_v32  ;;  %2337 = vrcp.f32 %v1636_v0  ;;  %v1630_v53 = vpop.xlane.xlu0 %1629 }
 0x4d4   : > { %1738 = vst [vmem:[%s3069_s26 + $0x28] sm:$0xff] %v1706_v24  ;;  %2339 = vrcp.f32 %v1630_v53 }
 0x4d5   : > { %v2330_v40 = vpop.eup %2329  ;;  %1743 = vst [vmem:[%s3069_s26 + $0x50] sm:$0xff] %v1711_v58 }
 0x4d6   : > { %v2332_v63 = vpop.eup %2331  ;;  %v1712_v27 = vmul.f32 %v2330_v40, %v2981_v56  ;;  %v1632_v4 = vpop.xlane.xlu1 %1631 }
 0x4d7   : > { %v1709_v6 = vmul.f32 %v2332_v63, %v2984_v61  ;;  %2341 = vrcp.f32 %v1632_v4  ;;  %v1642_v55 = vpop.xlane.xlu0 %1641 }
 0x4d8   : > { %1744 = vst [vmem:[%s3069_s26 + $0x58] sm:$0xff] %v1712_v27  ;;  %2343 = vrcp.f32 %v1642_v55 }
 0x4d9   : > { %v2334_v32 = vpop.eup %2333  ;;  %1741 = vst [vmem:[%s3069_s26 + $0x40] sm:$0xff] %v1709_v6 }
 0x4da   : > { %v2336_v30 = vpop.eup %2335  ;;  %v1710_v9 = vmul.f32 %v2334_v32, %v2989_v3  ;;  %v1644_v17 = vpop.xlane.xlu1 %1643 }
 0x4db   : > { %v1715_v47 = vmul.f32 %v2336_v30, %v2992_v39  ;;  %2345 = vrcp.f32 %v1644_v17  ;;  %v1638_v56 = vpop.xlane.xlu0 %1637 }
 0x4dc   : > { %1742 = vst [vmem:[%s3069_s26 + $0x48] sm:$0xff] %v1710_v9  ;;  %2347 = vrcp.f32 %v1638_v56 }
 0x4dd   : > { %v2338_v61 = vpop.eup %2337  ;;  %1747 = vst [vmem:[%s3069_s26 + $0x70] sm:$0xff] %v1715_v47 }
 0x4de   : > { %v2340_v19 = vpop.eup %2339  ;;  %v1716_v20 = vmul.f32 %v2338_v61, %v2997_v8  ;;  %v1640_v22 = vpop.xlane.xlu1 %1639 }
 0x4df   : > { %v1713_v13 = vmul.f32 %v2340_v19, %v3000_v46  ;;  %2349 = vrcp.f32 %v1640_v22  ;;  %v1650_v3 = vpop.xlane.xlu0 %1649 }
 0x4e0   : > { %1748 = vst [vmem:[%s3069_s26 + $0x78] sm:$0xff] %v1716_v20  ;;  %2351 = vrcp.f32 %v1650_v3 }
 0x4e1   : > { %v2342_v39 = vpop.eup %2341  ;;  %1745 = vst [vmem:[%s3069_s26 + $0x60] sm:$0xff] %v1713_v13 }
 0x4e2   : > { %v2344_v28 = vpop.eup %2343  ;;  %v1714_v52 = vmul.f32 %v2342_v39, %v3005_v57  ;;  %v1652_v29 = vpop.xlane.xlu1 %1651 }
 0x4e3   : > { %v1719_v35 = vmul.f32 %v2344_v28, %v3008_v49  ;;  %2353 = vrcp.f32 %v1652_v29  ;;  %v1646_v8 = vpop.xlane.xlu0 %1645 }
 0x4e4   : > { %1746 = vst [vmem:[%s3069_s26 + $0x68] sm:$0xff] %v1714_v52  ;;  %2355 = vrcp.f32 %v1646_v8 }
 0x4e5   : > { %v2346_v46 = vpop.eup %2345  ;;  %1751 = vst [vmem:[%s3069_s26 + $0x90] sm:$0xff] %v1719_v35 }
 0x4e6   : > { %v2348_v36 = vpop.eup %2347  ;;  %v1720_v16 = vmul.f32 %v2346_v46, %v3013_v15  ;;  %v1648_v54 = vpop.xlane.xlu1 %1647 }
 0x4e7   : > { %v1717_v5 = vmul.f32 %v2348_v36, %v3016_v37  ;;  %2357 = vrcp.f32 %v1648_v54  ;;  %v1658_v57 = vpop.xlane.xlu0 %1657 }
 0x4e8   : > { %1752 = vst [vmem:[%s3069_s26 + $0x98] sm:$0xff] %v1720_v16  ;;  %2359 = vrcp.f32 %v1658_v57 }
 0x4e9   : > { %v2350_v49 = vpop.eup %2349  ;;  %1749 = vst [vmem:[%s3069_s26 + $0x80] sm:$0xff] %v1717_v5 }
 0x4ea   : > { %v2352_v42 = vpop.eup %2351  ;;  %v1718_v43 = vmul.f32 %v2350_v49, %v3021_v18  ;;  %v1660_v45 = vpop.xlane.xlu1 %1659 }
 0x4eb   : > { %v1723_v48 = vmul.f32 %v2352_v42, %v3024_v50  ;;  %2361 = vrcp.f32 %v1660_v45  ;;  %v1654_v15 = vpop.xlane.xlu0 %1653 }
 0x4ec   : > { %1750 = vst [vmem:[%s3069_s26 + $0x88] sm:$0xff] %v1718_v43  ;;  %2363 = vrcp.f32 %v1654_v15 }
 0x4ed   : > { %v2354_v37 = vpop.eup %2353  ;;  %1755 = vst [vmem:[%s3069_s26 + $0xb0] sm:$0xff] %v1723_v48 }
 0x4ee   : > { %v2356_v21 = vpop.eup %2355  ;;  %v1724_v14 = vmul.f32 %v2354_v37, %v3029_v59  ;;  %v1656_v11 = vpop.xlane.xlu1 %1655 }
 0x4ef   : > { %v1721_v62 = vmul.f32 %v2356_v21, %v3031_v60  ;;  %2365 = vrcp.f32 %v1656_v11  ;;  %v1662_v18 = vpop.xlane.xlu0 %1661 }
 0x4f0   : > { %1756 = vst [vmem:[%s3069_s26 + $0xb8] sm:$0xff] %v1724_v14  ;;  %2367 = vrcp.f32 %v1662_v18 }
 0x4f1   : > { %v2358_v50 = vpop.eup %2357  ;;  %1753 = vst [vmem:[%s3069_s26 + $0xa0] sm:$0xff] %v1721_v62 }
 0x4f2   : > { %v2360_v51 = vpop.eup %2359  ;;  %v1722_v1 = vmul.f32 %v2358_v50, %v3037_v2  ;;  %v1664_v23 = vpop.xlane.xlu1 %1663 }
 0x4f3   : > { %v1727_v25 = vmul.f32 %v2360_v51, %v3039_v38  ;;  %2369 = vrcp.f32 %v1664_v23  ;;  %v1666_v59 = vpop.xlane.xlu0 %1665 }
 0x4f4   : > { %1754 = vst [vmem:[%s3069_s26 + $0xa8] sm:$0xff] %v1722_v1  ;;  %2371 = vrcp.f32 %v1666_v59 }
 0x4f5   : > { %v2362_v60 = vpop.eup %2361  ;;  %1759 = vst [vmem:[%s3069_s26 + $0xd0] sm:$0xff] %v1727_v25 }
 0x4f6   : > { %v2364_v26 = vpop.eup %2363  ;;  %v1728_v34 = vmul.f32 %v2362_v60, %v3044_v7  ;;  %v1668_v24 = vpop.xlane.xlu1 %1667 }
 0x4f7   : > { %v1725_v2 = vmul.f32 %v2364_v26, %v3046_v41  ;;  %2373 = vrcp.f32 %v1668_v24 }
 0x4f8   : > { %1760 = vst [vmem:[%s3069_s26 + $0xd8] sm:$0xff] %v1728_v34 }
 0x4f9   : > { %v2366_v38 = vpop.eup %2365  ;;  %1757 = vst [vmem:[%s3069_s26 + $0xc0] sm:$0xff] %v1725_v2 }
 0x4fa   : > { %v2368_v0 = vpop.eup %2367  ;;  %v1726_v58 = vmul.f32 %v2366_v38, %v3050_v31 }
 0x4fb   : > { %v1729_v53 = vmul.f32 %v2368_v0, %v3052_v10 }
 0x4fc   : > { %1758 = vst [vmem:[%s3069_s26 + $0xc8] sm:$0xff] %v1726_v58 }
 0x4fd   : > { %v2370_v40 = vpop.eup %2369  ;;  %1761 = vst [vmem:[%s3069_s26 + $0xe0] sm:$0xff] %v1729_v53 }
 0x4fe   : > { %v2372_v7 = vpop.eup %2371  ;;  %v1730_v41 = vmul.f32 %v2370_v40, %v3056_v33 }
 0x4ff   : > { %v1731_v63 = vmul.f32 %v2372_v7, %v3058_v44 }
 0x500   : > { %1762 = vst [vmem:[%s3069_s26 + $0xe8] sm:$0xff] %v1730_v41 }
 0x501   : > { %v2374_v27 = vpop.eup %2373  ;;  %1763 = vst [vmem:[%s3069_s26 + $0xf0] sm:$0xff] %v1731_v63 }
 0x502   : > { %v1732_v31 = vmul.f32 %v2374_v27, %v3062_v12 }
 0x504   : > { %1764 = vst [vmem:[%s3069_s26 + $0xf8] sm:$0xff] %v1732_v31 }
 0x505   : > { %2388 = shalt.err (!%p2385_p3)
}
 0x506   : > { %s2389_s23 = scalar_lea.hbm %s3137_s16, 4096  ;;  %s2393_s27 = scalar_lea.hbm %s3195_s9, 8192 }
 0x507   : > { %p2390_p4 = scmp.ne.s32.totalorder %s3137_s16, %s2389_s23  ;;  %p2394_p9 = scmp.lt.u32.totalorder %s3137_s16, %s3195_s9 }
 0x508   : > { %p2395_p10 = scmp.lt.u32.totalorder %s2393_s27, %s2389_s23  ;;  %p2397_p12 = scmp.lt.u32.totalorder %s2389_s23, %s3137_s16 }
 0x509   : > { %p2391_p7 = pnand %p2390_p4, %p2530_p5 }
 0x50a   : > { %p2396_p11 = por %p2395_p10, %p2394_p9 }
 0x50b   : > { %p2392_p8 = pneg %p2391_p7 }
 0x50c   : > { %p2398_p13 = por %p2397_p12, %p2396_p11 }
 0x50e   : > { %p2399_p0 = pnand %p2398_p13, %p2392_p8 }
 0x510   : > { %2402 = shalt.err (!%p2399_p0)
}
 0x511   : > { %s2440_s17 = smov 128   ;;  %s2441_s22 = smov 8  }
 0x512   : > { %2182 = dma.vmem_to_hbm [thread:$0]  (%p2530_p5), %s3139_s28, 4096, %s3137_s16, %s3145_s13, %s2440_s17, %s2440_s17, %s2441_s22  }
 0x513 PF: > { %p2188_p1 = scmp.ge.s32.totalorder %s2437_s12, 2  ;;  %s1794_s21 = sand.u32 1, %s2425_s30  }
 0x514   : > { %s1795_s24 = scalar_lea.sflag [#allocation3], %s1794_s21 }
 0x515   : > { %p2185_p2 = pnand %p2188_p1, %p2534_p6 }
 0x517   : > { %2420 = dma.done.wait (!%p2185_p2), %s1795_s24, 4096  }
 0x518   : > { %2422 = vsyncadd (!%p2185_p2), %s1795_s24, 4294963200  ;;  %p19_p3 = scmp.ge.s32.totalorder %s2517_s15, 4   ;;  %s3198_s30 = smov %s2429_s10 }
 0x519   : > { %s3199_s10 = smov %s2433_s11  ;;  %s3200_s11 = smov %s2528_s18 }
 0x51a   : > { %s3201_s12 = smov %s2517_s15  ;;  %21 = sbr.rel (!%p19_p3) target bundleno = 3 (0x3), region = 91 }
 0x521   :  { %1800 = vsyncpa [#allocation3], 1 }
 0x522   :  { %1802 = vsyncpa [#allocation3 + $0x1], 1 }

</bundles_post_ra>
